<compile_context>
chip_gen: v7x
topology: tpu7x:2x2x1
jax: 0.10.0
libtpu: 0.0.40
codegen_flags: <defaults>
</compile_context>

<pallas_src>
import functools

import jax
import jax.numpy as jnp
import numpy as np
from jax import lax
from jax.experimental import pallas as pl
from jax.experimental.pallas import tpu as pltpu

EPS = 1.1920929e-07            # torch.finfo(torch.float32).eps (nn.RMSNorm eps=None)
INV_SQRT2 = 0.7071067811865476
LANE = 128


# ---------------------------------------------------------------- helpers
def _round_up(n, m):
    return ((n + m - 1) // m) * m


def _pick_tile(n, candidates):
    for c in candidates:
        if n >= c and n % c == 0:
            return c
    return n


def _rmsnorm(x, gamma):
    # matches torch.nn.RMSNorm(dim, eps=None): x * rsqrt(mean(x^2) + eps) * w
    ms = jnp.mean(jnp.square(x), axis=-1, keepdims=True)
    return x * lax.rsqrt(ms + EPS) * gamma


def _gelu(x):
    # exact (erf) GELU, same as torch.nn.GELU default
    return 0.5 * x * (1.0 + lax.erf(x * INV_SQRT2))


def _cparams(sem, vmem_bytes):
    # computed per-kernel need (+ margin in the caller); floor 32 MiB, never
    # more than v5e/v6e physical (if it genuinely needs > 64 MiB it will not
    # run on v7x anyway).
    vmem = int(min(max(vmem_bytes, 32 * 1024 * 1024), 128 * 1024 * 1024))
    return pltpu.CompilerParams(dimension_semantics=sem, vmem_limit_bytes=vmem)


def _affine_scan(c, u, h0):
    """h_t = c_t * h_{t-1} + u_t along axis 0, with h_{-1} = h0 (shape (1, n)).

    Hierarchical scan: Kogge-Stone confined to 8-row (sublane) groups, then a
    sequential carry chain over the ts//8 groups.  Returns (h_seq, h_last).
    """
    ts = c.shape[0]
    a, b = c, u
    grp = min(8, ts)
    if grp > 1:
        # local-within-group position as a (ts, 1) column -> per-step mask is a
        # cheap column compare broadcast in the select, never a full-tile iota.
        gpos = lax.broadcasted_iota(jnp.int32, (ts, 1), 0) % grp
        shift = 1
        while shift < grp:
            m = gpos < shift
            a_prev = jnp.where(m, 1.0, pltpu.roll(a, shift, axis=0))
            b_prev = jnp.where(m, 0.0, pltpu.roll(b, shift, axis=0))
            b = a * b_prev + b          # compose: (a, b) o (a_prev, b_prev)
            a = a * a_prev
            shift *= 2
    # (a, b)[t] is now the cumulative affine map from its group start to t.
    # Carry h sequentially across groups (short serial chain of ts//8 fma's on
    # (8, n) tiles; co-issues with MXU work of neighbouring d_inner tiles).
    h = h0
    rows = []
    for g in range(ts // grp):
        blk = slice(g * grp, (g + 1) * grp)
        hg = a[blk, :] * h + b[blk, :]
        h = hg[grp - 1:grp, :]
        rows.append(hg)
    h_seq = rows[0] if len(rows) == 1 else jnp.concatenate(rows, axis=0)
    return h_seq, h


# ---------------------------------------------------------------- kernels
def layer_kernel(x_ref, g1_ref, wh_ref, wg_ref, wo_ref,
                 g2_ref, w1_ref, b1_ref, w2_ref, b2_ref,
                 o_ref, carry_ref, *, tdi, tk):
    # grid = (batch [parallel], seq_chunk [arbitrary -- carries hidden state]).
    # All weight refs hold the FULL (VMEM-resident) per-layer weights; the
    # d_inner / d_ff tiles are sliced inside the kernel.
    ts, D = x_ref.shape
    DI = wh_ref.shape[1]
    DFF = w1_ref.shape[1]

    @pl.when(pl.program_id(1) == 0)
    def _():
        # prev_hiddens is None in the reference forward -> scan starts from 0.
        # (Padded tail rows of the last chunk flow into the carry but are never
        #  consumed; harmless until return_prev_hiddens support is added.)
        carry_ref[...] = jnp.zeros_like(carry_ref)

    x = x_ref[...]                                            # (ts, D) fp32
    xn = _rmsnorm(x, g1_ref[...]).astype(jnp.bfloat16)        # cached for all tiles

    # ---- minGRU:  h_t = sigmoid(-gate)*h_{t-1} + sigmoid(gate)*g(hidden) ----
    acc = jnp.zeros((ts, D), jnp.float32)
    for k in range(DI // tdi):                                # static, unrolled
        lo, hi = k * tdi, (k + 1) * tdi
        hid = jnp.dot(xn, wh_ref[:, lo:hi], preferred_element_type=jnp.float32)
        gat = jnp.dot(xn, wg_ref[:, lo:hi], preferred_element_type=jnp.float32)
        c = jax.nn.sigmoid(-gat)                              # exp(-softplus(gate))
        u = (1.0 - c) * jnp.where(hid >= 0.0, hid + 0.5, jax.nn.sigmoid(hid))
        h_seq, h_last = _affine_scan(c, u, carry_ref[:, lo:hi])
        carry_ref[:, lo:hi] = h_last                          # cross-chunk carry
        acc = acc + jnp.dot(h_seq.astype(jnp.bfloat16), wo_ref[lo:hi, :],
                            preferred_element_type=jnp.float32)
    x = x + acc                                               # residual 1

    # ---- FeedForward -------------------------------------------------------
    yn = _rmsnorm(x, g2_ref[...]).astype(jnp.bfloat16)
    acc = jnp.zeros((ts, D), jnp.float32)
    for k in range(DFF // tk):                                # static, unrolled
        lo, hi = k * tk, (k + 1) * tk
        h = jnp.dot(yn, w1_ref[:, lo:hi], preferred_element_type=jnp.float32)
        h = _gelu(h + b1_ref[:, lo:hi])
        acc = acc + jnp.dot(h.astype(jnp.bfloat16), w2_ref[lo:hi, :],
                            preferred_element_type=jnp.float32)
    o_ref[...] = x + acc + b2_ref[...]                        # residual 2 + bias


def head_kernel(x_ref, g_ref, wl_ref, o_ref, norm_ref):
    # grid = (row_chunk [parallel], vocab_tile [arbitrary])
    @pl.when(pl.program_id(1) == 0)
    def _():
        # RMSNorm(x) cached once per row chunk instead of once per vocab tile.
        norm_ref[...] = _rmsnorm(x_ref[...], g_ref[...]).astype(norm_ref.dtype)
    o_ref[...] = jnp.dot(norm_ref[...], wl_ref[...],
                         preferred_element_type=jnp.float32)


# ---------------------------------------------------------------- wrappers
def run_layer(x, p, *, ts, tdi, tk):
    B, S, D = x.shape
    DI = p["w_hidden"].shape[1]
    DFF = p["w1"].shape[1]
    grid = (B, S // ts)

    w_names = ("w_hidden", "w_gate", "w_out", "w1", "w2")
    weight_bytes = 2 * sum(int(p[n].size) * 2 for n in w_names)   # bf16, x2 buffers
    vmem = (weight_bytes
            + 4 * ts * D * 4                 # x in + out, double-buffered
            + DI * 4                         # carry scratch
            + 12 * ts * max(tdi, tk, D) * 4  # live fp32 intermediates headroom
            + (8 << 20))

    kernel = functools.partial(layer_kernel, tdi=tdi, tk=tk)
    return pl.pallas_call(
        kernel,
        grid=grid,
        in_specs=[
            pl.BlockSpec((None, ts, D), lambda b, s: (b, s, 0)),   # x (streamed)
            pl.BlockSpec((1, D),        lambda b, s: (0, 0)),      # g1
            pl.BlockSpec((D, DI),       lambda b, s: (0, 0)),      # w_hidden (resident)
            pl.BlockSpec((D, DI),       lambda b, s: (0, 0)),      # w_gate   (resident)
            pl.BlockSpec((DI, D),       lambda b, s: (0, 0)),      # w_out    (resident)
            pl.BlockSpec((1, D),        lambda b, s: (0, 0)),      # g2
            pl.BlockSpec((D, DFF),      lambda b, s: (0, 0)),      # w1       (resident)
            pl.BlockSpec((1, DFF),      lambda b, s: (0, 0)),      # b1
            pl.BlockSpec((DFF, D),      lambda b, s: (0, 0)),      # w2       (resident)
            pl.BlockSpec((1, D),        lambda b, s: (0, 0)),      # b2
        ],
        out_specs=pl.BlockSpec((None, ts, D), lambda b, s: (b, s, 0)),
        out_shape=jax.ShapeDtypeStruct((B, S, D), jnp.float32),
        scratch_shapes=[pltpu.VMEM((1, DI), jnp.float32)],         # h carry
        input_output_aliases={0: 0},                               # reuse x's buffer
        compiler_params=_cparams(("parallel", "arbitrary"), vmem),
    )(x, p["g1"], p["w_hidden"], p["w_gate"], p["w_out"],
      p["g2"], p["w1"], p["b1"], p["w2"], p["b2"])


def run_head(x2d, g_final, w_logits, *, tr, tv):
    R, D = x2d.shape
    V = w_logits.shape[1]
    grid = (R // tr, V // tv)
    vmem = (2 * tr * D * 4 + 2 * D * tv * 2 + 2 * tr * tv * 4
            + tr * D * 2 + (8 << 20))
    return pl.pallas_call(
        head_kernel,
        grid=grid,
        in_specs=[
            pl.BlockSpec((tr, D), lambda r, v: (r, 0)),
            pl.BlockSpec((1, D),  lambda r, v: (0, 0)),
            pl.BlockSpec((D, tv), lambda r, v: (0, v)),
        ],
        out_specs=pl.BlockSpec((tr, tv), lambda r, v: (r, v)),
        out_shape=jax.ShapeDtypeStruct((R, V), jnp.float32),
        scratch_shapes=[pltpu.VMEM((tr, D), jnp.bfloat16)],        # cached RMSNorm(x)
        compiler_params=_cparams(("parallel", "arbitrary"), vmem),
    )(x2d, g_final, w_logits)


def min_lm_forward(tokens, params, seq_chunk=None):
    cfg = params["config"]
    B, S = tokens.shape
    D = cfg["dim"]
    x = jnp.take(params["emb"], tokens, axis=0)            # (B, S, D) fp32 gather (JAX)

    if seq_chunk is None:
        seq_chunk = 256 if S >= 256 else _round_up(S, 8)
    ts = seq_chunk
    s_pad = _round_up(S, ts)
    if s_pad != S:
        x = jnp.pad(x, ((0, 0), (0, s_pad - S), (0, 0)))    # pad at the (causal) end

    tdi = _pick_tile(cfg["d_inner_pad"], (256, 128))        # small-ish: scan live ranges
    tk = _pick_tile(cfg["d_ff_pad"], (512, 256, 128))
    tv = _pick_tile(cfg["vocab_pad"], (512, 256, 128))

    for lp in params["layers"]:
        # enable_conv=False and dropout=0.0 (module defaults) -> no conv / dropout.
        # TODO(synk): CausalDepthWiseConv1d path (enable_conv=True) not implemented.
        x = run_layer(x, lp, ts=ts, tdi=tdi, tk=tk)          # x = minGRU(N(x)) + x ; FF(N(x)) + x

    rows = B * s_pad                                         # fold batch into rows
    tr = _pick_tile(rows, (512, 256, 128))
    logits = run_head(x.reshape(rows, D), params["g_final"], params["w_logits"],
                      tr=tr, tv=tv)
    logits = logits.reshape(B, s_pad, -1)
    return logits[:, :S, :cfg["num_tokens"]]


# ---------------------------------------------------------------- reference
def min_lm_reference(tokens, params):
    """Pure-JAX reference with identical arithmetic choices (bf16 MXU inputs,
    fp32 accumulation & element-wise math), used to validate the kernels."""
    cfg = params["config"]

    def dot(a, w):
        return jnp.dot(a.astype(jnp.bfloat16), w, preferred_element_type=jnp.float32)

    x = jnp.take(params["emb"], tokens, axis=0)
    for lp in params["layers"]:
        h = _rmsnorm(x, lp["g1"])
        hid = dot(h, lp["w_hidden"])
        gat = dot(h, lp["w_gate"])
        c = jax.nn.sigmoid(-gat)
        u = (1.0 - c) * jnp.where(hid >= 0.0, hid + 0.5, jax.nn.sigmoid(hid))

        def step(h_prev, cu):
            c_t, u_t = cu
            h_t = c_t * h_prev + u_t
            return h_t, h_t

        _, hs = lax.scan(step, jnp.zeros_like(c[:, 0, :]),
                         (jnp.swapaxes(c, 0, 1), jnp.swapaxes(u, 0, 1)))
        hs = jnp.swapaxes(hs, 0, 1)
        x = dot(hs, lp["w_out"]) + x

        y = _gelu(dot(_rmsnorm(x, lp["g2"]), lp["w1"]) + lp["b1"])
        x = dot(y, lp["w2"]) + lp["b2"] + x

    logits = dot(_rmsnorm(x, params["g_final"]), params["w_logits"])
    return logits[:, :, :cfg["num_tokens"]]


# ---------------------------------------------------------------- params
def init_params(key, num_tokens, dim, depth, ff_mult=4, expansion=1.5):
    d_inner = int(dim * expansion)
    d_ff = int(dim * ff_mult)
    d_inner_p = _round_up(d_inner, LANE)   # lane-aligned, zero-padded (exact: pads are 0)
    d_ff_p = _round_up(d_ff, LANE)
    vocab_p = _round_up(num_tokens, LANE)

    def lin(k, fan_in, fan_out, pad_rows=None, pad_cols=None):
        # torch nn.Linear default init, zero-padded to lane-aligned shape, bf16 in HBM
        scale = 1.0 / (fan_in ** 0.5)
        w = jax.random.uniform(k, (fan_in, fan_out), jnp.float32, -scale, scale)
        rows = pad_rows if pad_rows is not None else fan_in
        cols = pad_cols if pad_cols is not None else fan_out
        w = jnp.pad(w, ((0, rows - fan_in), (0, cols - fan_out)))
        return w.astype(jnp.bfloat16)

    def bias(k, fan_in, fan_out, pad_cols=None):
        scale = 1.0 / (fan_in ** 0.5)
        b = jax.random.uniform(k, (1, fan_out), jnp.float32, -scale, scale)
        cols = pad_cols if pad_cols is not None else fan_out
        return jnp.pad(b, ((0, 0), (0, cols - fan_out)))   # fp32

    keys = jax.random.split(key, 2 + depth)
    params = {
        "config": {"num_tokens": num_tokens, "dim": dim,
                   "d_inner": d_inner, "d_inner_pad": d_inner_p,
                   "d_ff": d_ff, "d_ff_pad": d_ff_p, "vocab_pad": vocab_p},
        "emb": 0.02 * jax.random.normal(keys[0], (num_tokens, dim), jnp.float32),
        "g_final": jnp.ones((1, dim), jnp.float32),
        "w_logits": lin(keys[1], dim, num_tokens, pad_cols=vocab_p),   # bias=False
        "layers": [],
    }
    for li in range(depth):
        lk = jax.random.split(keys[2 + li], 8)
        params["layers"].append({
            "g1": jnp.ones((1, dim), jnp.float32),
            # minGRU to_hidden_and_gate (bias=False), split into two lane-aligned mats
            "w_hidden": lin(lk[0], dim, d_inner, pad_cols=d_inner_p),
            "w_gate": lin(lk[1], dim, d_inner, pad_cols=d_inner_p),
            "w_out": lin(lk[2], d_inner, dim, pad_rows=d_inner_p),     # bias=False
            "g2": jnp.ones((1, dim), jnp.float32),
            "w1": lin(lk[3], dim, d_ff, pad_cols=d_ff_p),
            "b1": bias(lk[4], dim, d_ff, pad_cols=d_ff_p),
            "w2": lin(lk[5], d_ff, dim, pad_rows=d_ff_p),
            "b2": bias(lk[6], d_ff, dim),
        })
    return params


if __name__ == "__main__":
    # Small shapes; seq_chunk=32 with S=64 exercises the multi-group scan, the
    # cross-group carry chain and the cross-chunk carry (two seq chunks).
    B, S = 2, 64
    num_tokens, dim, depth = 64, 32, 2

    key = jax.random.PRNGKey(0)
    pkey, tkey = jax.random.split(key)
    params = init_params(pkey, num_tokens, dim, depth)
    tokens = jax.random.randint(tkey, (B, S), 0, num_tokens, dtype=jnp.int32)

    fwd = jax.jit(lambda t: min_lm_forward(t, params, seq_chunk=32))
    logits = jax.block_until_ready(fwd(tokens))
    assert logits.shape == (B, S, num_tokens)
    assert logits.dtype == jnp.float32

    ref = jax.block_until_ready(min_lm_reference(tokens, params))
    np.testing.assert_allclose(np.asarray(logits), np.asarray(ref),
                               rtol=1e-2, atol=1e-2)
    print("KERNEL_OK")
</pallas_src>

<mosaic_0001>
module attributes {stable_mosaic.version = 11 : i64} {
  func.func @layer_kernel(%arg0: i32, %arg1: i32, %arg2: memref<1x32x32xf32, #tpu.memory_space<vmem>>, %arg3: memref<1x32xf32, #tpu.memory_space<vmem>>, %arg4: memref<32x128xbf16, #tpu.memory_space<vmem>>, %arg5: memref<32x128xbf16, #tpu.memory_space<vmem>>, %arg6: memref<128x32xbf16, #tpu.memory_space<vmem>>, %arg7: memref<1x32xf32, #tpu.memory_space<vmem>>, %arg8: memref<32x128xbf16, #tpu.memory_space<vmem>>, %arg9: memref<1x128xf32, #tpu.memory_space<vmem>>, %arg10: memref<128x32xbf16, #tpu.memory_space<vmem>>, %arg11: memref<1x32xf32, #tpu.memory_space<vmem>>, %arg12: memref<1x32x32xf32, #tpu.memory_space<vmem>>, %arg13: memref<1x128xf32, #tpu.memory_space<vmem>>) attributes {dimension_semantics = [#tpu.dimension_semantics<parallel>, #tpu.dimension_semantics<arbitrary>], iteration_bounds = array<i64: 2, 2>, scalar_prefetch = 0 : i64, scratch_operands = 1 : i64, tpu.core_type = #tpu.core_type<tc>, window_params = [{transform_indices = @transform_0, window_bounds = array<i64: 1, 32, 32>}, {pipeline_mode = #tpu.pipeline_mode<synchronous>, transform_indices = @transform_1, window_bounds = array<i64: 1, 32>}, {pipeline_mode = #tpu.pipeline_mode<synchronous>, transform_indices = @transform_2, window_bounds = array<i64: 32, 128>}, {pipeline_mode = #tpu.pipeline_mode<synchronous>, transform_indices = @transform_3, window_bounds = array<i64: 32, 128>}, {pipeline_mode = #tpu.pipeline_mode<synchronous>, transform_indices = @transform_4, window_bounds = array<i64: 128, 32>}, {pipeline_mode = #tpu.pipeline_mode<synchronous>, transform_indices = @transform_5, window_bounds = array<i64: 1, 32>}, {pipeline_mode = #tpu.pipeline_mode<synchronous>, transform_indices = @transform_6, window_bounds = array<i64: 32, 128>}, {pipeline_mode = #tpu.pipeline_mode<synchronous>, transform_indices = @transform_7, window_bounds = array<i64: 1, 128>}, {pipeline_mode = #tpu.pipeline_mode<synchronous>, transform_indices = @transform_8, window_bounds = array<i64: 128, 32>}, {pipeline_mode = #tpu.pipeline_mode<synchronous>, transform_indices = @transform_9, window_bounds = array<i64: 1, 32>}, {transform_indices = @transform_10, window_bounds = array<i64: 1, 32, 32>}]} {
    %c0_i32 = arith.constant 0 : i32
    %0 = arith.cmpi eq, %arg1, %c0_i32 : i32
    %1 = arith.extui %0 : i1 to i32
    %c0_i32_0 = arith.constant 0 : i32
    %2 = arith.cmpi ne, %1, %c0_i32_0 : i32
    scf.if %2 {
      %cst_66 = arith.constant 0.000000e+00 : f32
      %177 = vector.broadcast %cst_66 : f32 to vector<1x128xf32>
      %c0_67 = arith.constant 0 : index
      %c0_68 = arith.constant 0 : index
      %178 = vector.load %arg13[%c0_67, %c0_68] : memref<1x128xf32, #tpu.memory_space<vmem>>, vector<1x128xf32>
      tpu.vector_store %arg13[%c0_67, %c0_68], %177 {strides = array<i32>} : memref<1x128xf32, #tpu.memory_space<vmem>>, vector<1x128xf32>,
    } else {
    }
    %c0 = arith.constant 0 : index
    %c0_1 = arith.constant 0 : index
    %c0_2 = arith.constant 0 : index
    %3 = vector.load %arg2[%c0, %c0_1, %c0_2] : memref<1x32x32xf32, #tpu.memory_space<vmem>>, vector<1x32x32xf32>
    %4 = vector.shape_cast %3 : vector<1x32x32xf32> to vector<32x32xf32>
    %c0_3 = arith.constant 0 : index
    %c0_4 = arith.constant 0 : index
    %5 = vector.load %arg3[%c0_3, %c0_4] : memref<1x32xf32, #tpu.memory_space<vmem>>, vector<1x32xf32>
    %6 = arith.mulf %4, %4 : vector<32x32xf32>
    %cst = arith.constant dense<0.000000e+00> : vector<32xf32>
    %7 = vector.multi_reduction <add>, %6, %cst [1] : vector<32x32xf32> to vector<32xf32>
    %8 = vector.shape_cast %7 : vector<32xf32> to vector<32x1xf32>
    %cst_5 = arith.constant 3.200000e+01 : f32
    %9 = vector.broadcast %cst_5 : f32 to vector<32x1xf32>
    %10 = arith.divf %8, %9 : vector<32x1xf32>
    %cst_6 = arith.constant 1.1920929E-7 : f32
    %11 = vector.broadcast %cst_6 : f32 to vector<32x1xf32>
    %12 = arith.addf %10, %11 : vector<32x1xf32>
    %13 = math.rsqrt %12 : vector<32x1xf32>
    %14 = vector.broadcast %13 : vector<32x1xf32> to vector<32x32xf32>
    %15 = arith.mulf %4, %14 : vector<32x32xf32>
    %16 = vector.broadcast %5 : vector<1x32xf32> to vector<32x32xf32>
    %17 = arith.mulf %15, %16 : vector<32x32xf32>
    %18 = arith.truncf %17 : vector<32x32xf32> to vector<32x32xbf16>
    %cst_7 = arith.constant 0.000000e+00 : f32
    %19 = vector.broadcast %cst_7 : f32 to vector<32x32xf32>
    %c0_8 = arith.constant 0 : index
    %c0_9 = arith.constant 0 : index
    %20 = vector.load %arg4[%c0_8, %c0_9] : memref<32x128xbf16, #tpu.memory_space<vmem>>, vector<32x128xbf16>
    %cst_10 = arith.constant dense<0.000000e+00> : vector<32x128xf32>
    %21 = tpu.matmul %18, %20, %cst_10 {dimension_numbers = #tpu.dot_dimension_numbers<[1], [0], [0], [1], [0, 0, 1, 1], [], []>} : vector<32x32xbf16>, vector<32x128xbf16>, vector<32x128xf32> -> vector<32x128xf32>
    %c0_11 = arith.constant 0 : index
    %c0_12 = arith.constant 0 : index
    %22 = vector.load %arg5[%c0_11, %c0_12] : memref<32x128xbf16, #tpu.memory_space<vmem>>, vector<32x128xbf16>
    %cst_13 = arith.constant dense<0.000000e+00> : vector<32x128xf32>
    %23 = tpu.matmul %18, %22, %cst_13 {dimension_numbers = #tpu.dot_dimension_numbers<[1], [0], [0], [1], [0, 0, 1, 1], [], []>} : vector<32x32xbf16>, vector<32x128xbf16>, vector<32x128xf32> -> vector<32x128xf32>
    %cst_14 = arith.constant 0.000000e+00 : f32
    %24 = vector.broadcast %cst_14 : f32 to vector<32x128xf32>
    %25 = arith.subf %24, %23 : vector<32x128xf32>
    %26 = arith.negf %25 : vector<32x128xf32>
    %27 = math.exp %26 : vector<32x128xf32>
    %cst_15 = arith.constant 1.000000e+00 : f32
    %28 = vector.broadcast %cst_15 : f32 to vector<32x128xf32>
    %29 = arith.addf %28, %27 : vector<32x128xf32>
    %30 = arith.divf %28, %29 : vector<32x128xf32>
    %cst_16 = arith.constant 1.000000e+00 : f32
    %31 = vector.broadcast %cst_16 : f32 to vector<32x128xf32>
    %32 = arith.subf %31, %30 : vector<32x128xf32>
    %cst_17 = arith.constant 0.000000e+00 : f32
    %33 = vector.broadcast %cst_17 : f32 to vector<32x128xf32>
    %34 = arith.cmpf oge, %21, %33 : vector<32x128xf32>
    %cst_18 = arith.constant 5.000000e-01 : f32
    %35 = vector.broadcast %cst_18 : f32 to vector<32x128xf32>
    %36 = arith.addf %21, %35 : vector<32x128xf32>
    %37 = arith.negf %21 : vector<32x128xf32>
    %38 = math.exp %37 : vector<32x128xf32>
    %cst_19 = arith.constant 1.000000e+00 : f32
    %39 = vector.broadcast %cst_19 : f32 to vector<32x128xf32>
    %40 = arith.addf %39, %38 : vector<32x128xf32>
    %41 = arith.divf %39, %40 : vector<32x128xf32>
    %42 = arith.select %34, %36, %41 : vector<32x128xi1>, vector<32x128xf32>
    %43 = arith.mulf %32, %42 : vector<32x128xf32>
    %c0_20 = arith.constant 0 : index
    %c0_21 = arith.constant 0 : index
    %44 = vector.load %arg13[%c0_20, %c0_21] : memref<1x128xf32, #tpu.memory_space<vmem>>, vector<1x128xf32>
    %45 = tpu.iota {dimensions = array<i32: 0>} : vector<32x1xi32>
    %c8_i32 = arith.constant 8 : i32
    %c0_i32_22 = arith.constant 0 : i32
    %46 = arith.cmpi eq, %c8_i32, %c0_i32_22 : i32
    %c1_i32 = arith.constant 1 : i32
    %47 = arith.select %46, %c1_i32, %c8_i32 : i32
    %48 = vector.broadcast %47 : i32 to vector<32x1xi32>
    %49 = arith.remsi %45, %48 : vector<32x1xi32>
    %c0_i32_23 = arith.constant 0 : i32
    %50 = vector.broadcast %c0_i32_23 : i32 to vector<32x1xi32>
    %51 = arith.cmpi ne, %49, %50 : vector<32x1xi32>
    %c0_i32_24 = arith.constant 0 : i32
    %52 = vector.broadcast %c0_i32_24 : i32 to vector<32x1xi32>
    %53 = arith.cmpi slt, %49, %52 : vector<32x1xi32>
    %c0_i32_25 = arith.constant 0 : i32
    %54 = arith.cmpi slt, %47, %c0_i32_25 : i32
    %55 = vector.broadcast %54 : i1 to vector<32x1xi1>
    %56 = vector.broadcast %55 : vector<32x1xi1> to vector<32x1xi1>
    %57 = arith.xori %53, %56 : vector<32x1xi1>
    %58 = arith.andi %57, %51 : vector<32x1xi1>
    %59 = vector.broadcast %47 : i32 to vector<32x1xi32>
    %60 = arith.addi %49, %59 : vector<32x1xi32>
    %61 = arith.select %58, %60, %49 : vector<32x1xi1>, vector<32x1xi32>
    %c1_i32_26 = arith.constant 1 : i32
    %62 = vector.broadcast %c1_i32_26 : i32 to vector<32x1xi32>
    %63 = arith.cmpi slt, %61, %62 : vector<32x1xi32>
    %c1_i32_27 = arith.constant 1 : i32
    %64 = tpu.dynamic_rotate %30 by %c1_i32_27 dim 0 : vector<32x128xf32>, i32 -> vector<32x128xf32>
    %cst_28 = arith.constant 1.000000e+00 : f32
    %65 = vector.shape_cast %63 : vector<32x1xi1> to vector<32x1xi1>
    %66 = vector.broadcast %65 : vector<32x1xi1> to vector<32x128xi1>
    %67 = vector.broadcast %cst_28 : f32 to vector<32x128xf32>
    %68 = arith.select %66, %67, %64 : vector<32x128xi1>, vector<32x128xf32>
    %c1_i32_29 = arith.constant 1 : i32
    %69 = tpu.dynamic_rotate %43 by %c1_i32_29 dim 0 : vector<32x128xf32>, i32 -> vector<32x128xf32>
    %cst_30 = arith.constant 0.000000e+00 : f32
    %70 = vector.shape_cast %63 : vector<32x1xi1> to vector<32x1xi1>
    %71 = vector.broadcast %70 : vector<32x1xi1> to vector<32x128xi1>
    %72 = vector.broadcast %cst_30 : f32 to vector<32x128xf32>
    %73 = arith.select %71, %72, %69 : vector<32x128xi1>, vector<32x128xf32>
    %74 = arith.mulf %30, %73 : vector<32x128xf32>
    %75 = arith.addf %74, %43 : vector<32x128xf32>
    %76 = arith.mulf %30, %68 : vector<32x128xf32>
    %c2_i32 = arith.constant 2 : i32
    %77 = vector.broadcast %c2_i32 : i32 to vector<32x1xi32>
    %78 = arith.cmpi slt, %61, %77 : vector<32x1xi32>
    %c2_i32_31 = arith.constant 2 : i32
    %79 = tpu.dynamic_rotate %76 by %c2_i32_31 dim 0 : vector<32x128xf32>, i32 -> vector<32x128xf32>
    %cst_32 = arith.constant 1.000000e+00 : f32
    %80 = vector.shape_cast %78 : vector<32x1xi1> to vector<32x1xi1>
    %81 = vector.broadcast %80 : vector<32x1xi1> to vector<32x128xi1>
    %82 = vector.broadcast %cst_32 : f32 to vector<32x128xf32>
    %83 = arith.select %81, %82, %79 : vector<32x128xi1>, vector<32x128xf32>
    %c2_i32_33 = arith.constant 2 : i32
    %84 = tpu.dynamic_rotate %75 by %c2_i32_33 dim 0 : vector<32x128xf32>, i32 -> vector<32x128xf32>
    %cst_34 = arith.constant 0.000000e+00 : f32
    %85 = vector.shape_cast %78 : vector<32x1xi1> to vector<32x1xi1>
    %86 = vector.broadcast %85 : vector<32x1xi1> to vector<32x128xi1>
    %87 = vector.broadcast %cst_34 : f32 to vector<32x128xf32>
    %88 = arith.select %86, %87, %84 : vector<32x128xi1>, vector<32x128xf32>
    %89 = arith.mulf %76, %88 : vector<32x128xf32>
    %90 = arith.addf %89, %75 : vector<32x128xf32>
    %91 = arith.mulf %76, %83 : vector<32x128xf32>
    %c4_i32 = arith.constant 4 : i32
    %92 = vector.broadcast %c4_i32 : i32 to vector<32x1xi32>
    %93 = arith.cmpi slt, %61, %92 : vector<32x1xi32>
    %c4_i32_35 = arith.constant 4 : i32
    %94 = tpu.dynamic_rotate %91 by %c4_i32_35 dim 0 : vector<32x128xf32>, i32 -> vector<32x128xf32>
    %cst_36 = arith.constant 1.000000e+00 : f32
    %95 = vector.shape_cast %93 : vector<32x1xi1> to vector<32x1xi1>
    %96 = vector.broadcast %95 : vector<32x1xi1> to vector<32x128xi1>
    %97 = vector.broadcast %cst_36 : f32 to vector<32x128xf32>
    %98 = arith.select %96, %97, %94 : vector<32x128xi1>, vector<32x128xf32>
    %c4_i32_37 = arith.constant 4 : i32
    %99 = tpu.dynamic_rotate %90 by %c4_i32_37 dim 0 : vector<32x128xf32>, i32 -> vector<32x128xf32>
    %cst_38 = arith.constant 0.000000e+00 : f32
    %100 = vector.shape_cast %93 : vector<32x1xi1> to vector<32x1xi1>
    %101 = vector.broadcast %100 : vector<32x1xi1> to vector<32x128xi1>
    %102 = vector.broadcast %cst_38 : f32 to vector<32x128xf32>
    %103 = arith.select %101, %102, %99 : vector<32x128xi1>, vector<32x128xf32>
    %104 = arith.mulf %91, %103 : vector<32x128xf32>
    %105 = arith.addf %104, %90 : vector<32x128xf32>
    %106 = arith.mulf %91, %98 : vector<32x128xf32>
    %107 = vector.extract_strided_slice %106 {offsets = [0, 0], sizes = [8, 128], strides = [1, 1]} : vector<32x128xf32> to vector<8x128xf32>
    %108 = vector.broadcast %44 : vector<1x128xf32> to vector<8x128xf32>
    %109 = arith.mulf %107, %108 : vector<8x128xf32>
    %110 = vector.extract_strided_slice %105 {offsets = [0, 0], sizes = [8, 128], strides = [1, 1]} : vector<32x128xf32> to vector<8x128xf32>
    %111 = arith.addf %109, %110 : vector<8x128xf32>
    %112 = vector.extract_strided_slice %111 {offsets = [7, 0], sizes = [1, 128], strides = [1, 1]} : vector<8x128xf32> to vector<1x128xf32>
    %113 = vector.extract_strided_slice %106 {offsets = [8, 0], sizes = [8, 128], strides = [1, 1]} : vector<32x128xf32> to vector<8x128xf32>
    %114 = vector.broadcast %112 : vector<1x128xf32> to vector<8x128xf32>
    %115 = arith.mulf %113, %114 : vector<8x128xf32>
    %116 = vector.extract_strided_slice %105 {offsets = [8, 0], sizes = [8, 128], strides = [1, 1]} : vector<32x128xf32> to vector<8x128xf32>
    %117 = arith.addf %115, %116 : vector<8x128xf32>
    %118 = vector.extract_strided_slice %117 {offsets = [7, 0], sizes = [1, 128], strides = [1, 1]} : vector<8x128xf32> to vector<1x128xf32>
    %119 = vector.extract_strided_slice %106 {offsets = [16, 0], sizes = [8, 128], strides = [1, 1]} : vector<32x128xf32> to vector<8x128xf32>
    %120 = vector.broadcast %118 : vector<1x128xf32> to vector<8x128xf32>
    %121 = arith.mulf %119, %120 : vector<8x128xf32>
    %122 = vector.extract_strided_slice %105 {offsets = [16, 0], sizes = [8, 128], strides = [1, 1]} : vector<32x128xf32> to vector<8x128xf32>
    %123 = arith.addf %121, %122 : vector<8x128xf32>
    %124 = vector.extract_strided_slice %123 {offsets = [7, 0], sizes = [1, 128], strides = [1, 1]} : vector<8x128xf32> to vector<1x128xf32>
    %125 = vector.extract_strided_slice %106 {offsets = [24, 0], sizes = [8, 128], strides = [1, 1]} : vector<32x128xf32> to vector<8x128xf32>
    %126 = vector.broadcast %124 : vector<1x128xf32> to vector<8x128xf32>
    %127 = arith.mulf %125, %126 : vector<8x128xf32>
    %128 = vector.extract_strided_slice %105 {offsets = [24, 0], sizes = [8, 128], strides = [1, 1]} : vector<32x128xf32> to vector<8x128xf32>
    %129 = arith.addf %127, %128 : vector<8x128xf32>
    %130 = vector.extract_strided_slice %129 {offsets = [7, 0], sizes = [1, 128], strides = [1, 1]} : vector<8x128xf32> to vector<1x128xf32>
    %131 = tpu.concatenate %111, %117, %123, %129 in 0 : vector<8x128xf32>, vector<8x128xf32>, vector<8x128xf32>, vector<8x128xf32> -> vector<32x128xf32>
    %c0_39 = arith.constant 0 : index
    %c0_40 = arith.constant 0 : index
    %132 = vector.load %arg13[%c0_39, %c0_40] : memref<1x128xf32, #tpu.memory_space<vmem>>, vector<1x128xf32>
    tpu.vector_store %arg13[%c0_39, %c0_40], %130 {strides = array<i32>} : memref<1x128xf32, #tpu.memory_space<vmem>>, vector<1x128xf32>,
    %133 = arith.truncf %131 : vector<32x128xf32> to vector<32x128xbf16>
    %c0_41 = arith.constant 0 : index
    %c0_42 = arith.constant 0 : index
    %134 = vector.load %arg6[%c0_41, %c0_42] : memref<128x32xbf16, #tpu.memory_space<vmem>>, vector<128x32xbf16>
    %cst_43 = arith.constant dense<0.000000e+00> : vector<32x32xf32>
    %135 = tpu.matmul %133, %134, %cst_43 {dimension_numbers = #tpu.dot_dimension_numbers<[1], [0], [0], [1], [0, 0, 1, 1], [], []>} : vector<32x128xbf16>, vector<128x32xbf16>, vector<32x32xf32> -> vector<32x32xf32>
    %136 = arith.addf %19, %135 : vector<32x32xf32>
    %137 = arith.addf %4, %136 : vector<32x32xf32>
    %c0_44 = arith.constant 0 : index
    %c0_45 = arith.constant 0 : index
    %138 = vector.load %arg7[%c0_44, %c0_45] : memref<1x32xf32, #tpu.memory_space<vmem>>, vector<1x32xf32>
    %139 = arith.mulf %137, %137 : vector<32x32xf32>
    %cst_46 = arith.constant dense<0.000000e+00> : vector<32xf32>
    %140 = vector.multi_reduction <add>, %139, %cst_46 [1] : vector<32x32xf32> to vector<32xf32>
    %141 = vector.shape_cast %140 : vector<32xf32> to vector<32x1xf32>
    %cst_47 = arith.constant 3.200000e+01 : f32
    %142 = vector.broadcast %cst_47 : f32 to vector<32x1xf32>
    %143 = arith.divf %141, %142 : vector<32x1xf32>
    %cst_48 = arith.constant 1.1920929E-7 : f32
    %144 = vector.broadcast %cst_48 : f32 to vector<32x1xf32>
    %145 = arith.addf %143, %144 : vector<32x1xf32>
    %146 = math.rsqrt %145 : vector<32x1xf32>
    %147 = vector.broadcast %146 : vector<32x1xf32> to vector<32x32xf32>
    %148 = arith.mulf %137, %147 : vector<32x32xf32>
    %149 = vector.broadcast %138 : vector<1x32xf32> to vector<32x32xf32>
    %150 = arith.mulf %148, %149 : vector<32x32xf32>
    %151 = arith.truncf %150 : vector<32x32xf32> to vector<32x32xbf16>
    %cst_49 = arith.constant 0.000000e+00 : f32
    %152 = vector.broadcast %cst_49 : f32 to vector<32x32xf32>
    %c0_50 = arith.constant 0 : index
    %c0_51 = arith.constant 0 : index
    %153 = vector.load %arg8[%c0_50, %c0_51] : memref<32x128xbf16, #tpu.memory_space<vmem>>, vector<32x128xbf16>
    %cst_52 = arith.constant dense<0.000000e+00> : vector<32x128xf32>
    %154 = tpu.matmul %151, %153, %cst_52 {dimension_numbers = #tpu.dot_dimension_numbers<[1], [0], [0], [1], [0, 0, 1, 1], [], []>} : vector<32x32xbf16>, vector<32x128xbf16>, vector<32x128xf32> -> vector<32x128xf32>
    %c0_53 = arith.constant 0 : index
    %c0_54 = arith.constant 0 : index
    %155 = vector.load %arg9[%c0_53, %c0_54] : memref<1x128xf32, #tpu.memory_space<vmem>>, vector<1x128xf32>
    %156 = vector.broadcast %155 : vector<1x128xf32> to vector<32x128xf32>
    %157 = arith.addf %154, %156 : vector<32x128xf32>
    %cst_55 = arith.constant 5.000000e-01 : f32
    %158 = vector.broadcast %cst_55 : f32 to vector<32x128xf32>
    %159 = arith.mulf %158, %157 : vector<32x128xf32>
    %cst_56 = arith.constant 0.707106769 : f32
    %160 = vector.broadcast %cst_56 : f32 to vector<32x128xf32>
    %161 = arith.mulf %157, %160 : vector<32x128xf32>
    %162 = math.erf %161 : vector<32x128xf32>
    %cst_57 = arith.constant 1.000000e+00 : f32
    %163 = vector.broadcast %cst_57 : f32 to vector<32x128xf32>
    %164 = arith.addf %163, %162 : vector<32x128xf32>
    %165 = arith.mulf %159, %164 : vector<32x128xf32>
    %166 = arith.truncf %165 : vector<32x128xf32> to vector<32x128xbf16>
    %c0_58 = arith.constant 0 : index
    %c0_59 = arith.constant 0 : index
    %167 = vector.load %arg10[%c0_58, %c0_59] : memref<128x32xbf16, #tpu.memory_space<vmem>>, vector<128x32xbf16>
    %cst_60 = arith.constant dense<0.000000e+00> : vector<32x32xf32>
    %168 = tpu.matmul %166, %167, %cst_60 {dimension_numbers = #tpu.dot_dimension_numbers<[1], [0], [0], [1], [0, 0, 1, 1], [], []>} : vector<32x128xbf16>, vector<128x32xbf16>, vector<32x32xf32> -> vector<32x32xf32>
    %169 = arith.addf %152, %168 : vector<32x32xf32>
    %170 = arith.addf %137, %169 : vector<32x32xf32>
    %c0_61 = arith.constant 0 : index
    %c0_62 = arith.constant 0 : index
    %171 = vector.load %arg11[%c0_61, %c0_62] : memref<1x32xf32, #tpu.memory_space<vmem>>, vector<1x32xf32>
    %172 = vector.broadcast %171 : vector<1x32xf32> to vector<32x32xf32>
    %173 = arith.addf %170, %172 : vector<32x32xf32>
    %c0_63 = arith.constant 0 : index
    %c0_64 = arith.constant 0 : index
    %c0_65 = arith.constant 0 : index
    %174 = vector.load %arg12[%c0_63, %c0_64, %c0_65] : memref<1x32x32xf32, #tpu.memory_space<vmem>>, vector<1x32x32xf32>
    %175 = vector.shape_cast %174 : vector<1x32x32xf32> to vector<32x32xf32>
    %176 = vector.shape_cast %173 : vector<32x32xf32> to vector<1x32x32xf32>
    tpu.vector_store %arg12[%c0_63, %c0_64, %c0_65], %176 {strides = array<i32>} : memref<1x32x32xf32, #tpu.memory_space<vmem>>, vector<1x32x32xf32>,
    return
  }
  func.func @transform_0(%arg0: i32, %arg1: i32) -> (i32, i32, i32) {
    %c0_i32 = arith.constant 0 : i32
    %c0_i32_0 = arith.constant 0 : i32
    return %arg0, %arg1, %c0_i32 : i32, i32, i32
  }
  func.func @transform_1(%arg0: i32, %arg1: i32) -> (i32, i32) {
    %c0_i32 = arith.constant 0 : i32
    %c0_i32_0 = arith.constant 0 : i32
    %c0_i32_1 = arith.constant 0 : i32
    return %c0_i32, %c0_i32_0 : i32, i32
  }
  func.func @transform_2(%arg0: i32, %arg1: i32) -> (i32, i32) {
    %c0_i32 = arith.constant 0 : i32
    %c0_i32_0 = arith.constant 0 : i32
    %c0_i32_1 = arith.constant 0 : i32
    return %c0_i32, %c0_i32_0 : i32, i32
  }
  func.func @transform_3(%arg0: i32, %arg1: i32) -> (i32, i32) {
    %c0_i32 = arith.constant 0 : i32
    %c0_i32_0 = arith.constant 0 : i32
    %c0_i32_1 = arith.constant 0 : i32
    return %c0_i32, %c0_i32_0 : i32, i32
  }
  func.func @transform_4(%arg0: i32, %arg1: i32) -> (i32, i32) {
    %c0_i32 = arith.constant 0 : i32
    %c0_i32_0 = arith.constant 0 : i32
    %c0_i32_1 = arith.constant 0 : i32
    return %c0_i32, %c0_i32_0 : i32, i32
  }
  func.func @transform_5(%arg0: i32, %arg1: i32) -> (i32, i32) {
    %c0_i32 = arith.constant 0 : i32
    %c0_i32_0 = arith.constant 0 : i32
    %c0_i32_1 = arith.constant 0 : i32
    return %c0_i32, %c0_i32_0 : i32, i32
  }
  func.func @transform_6(%arg0: i32, %arg1: i32) -> (i32, i32) {
    %c0_i32 = arith.constant 0 : i32
    %c0_i32_0 = arith.constant 0 : i32
    %c0_i32_1 = arith.constant 0 : i32
    return %c0_i32, %c0_i32_0 : i32, i32
  }
  func.func @transform_7(%arg0: i32, %arg1: i32) -> (i32, i32) {
    %c0_i32 = arith.constant 0 : i32
    %c0_i32_0 = arith.constant 0 : i32
    %c0_i32_1 = arith.constant 0 : i32
    return %c0_i32, %c0_i32_0 : i32, i32
  }
  func.func @transform_8(%arg0: i32, %arg1: i32) -> (i32, i32) {
    %c0_i32 = arith.constant 0 : i32
    %c0_i32_0 = arith.constant 0 : i32
    %c0_i32_1 = arith.constant 0 : i32
    return %c0_i32, %c0_i32_0 : i32, i32
  }
  func.func @transform_9(%arg0: i32, %arg1: i32) -> (i32, i32) {
    %c0_i32 = arith.constant 0 : i32
    %c0_i32_0 = arith.constant 0 : i32
    %c0_i32_1 = arith.constant 0 : i32
    return %c0_i32, %c0_i32_0 : i32, i32
  }
  func.func @transform_10(%arg0: i32, %arg1: i32) -> (i32, i32, i32) {
    %c0_i32 = arith.constant 0 : i32
    %c0_i32_0 = arith.constant 0 : i32
    return %arg0, %arg1, %c0_i32 : i32, i32, i32
  }
}

module attributes {stable_mosaic.version = 11 : i64} {
  func.func @head_kernel(%arg0: i32, %arg1: i32, %arg2: memref<128x32xf32, #tpu.memory_space<vmem>>, %arg3: memref<1x32xf32, #tpu.memory_space<vmem>>, %arg4: memref<32x128xbf16, #tpu.memory_space<vmem>>, %arg5: memref<128x128xf32, #tpu.memory_space<vmem>>, %arg6: memref<128x32xbf16, #tpu.memory_space<vmem>>) attributes {dimension_semantics = [#tpu.dimension_semantics<parallel>, #tpu.dimension_semantics<arbitrary>], iteration_bounds = array<i64: 1, 1>, scalar_prefetch = 0 : i64, scratch_operands = 1 : i64, tpu.core_type = #tpu.core_type<tc>, window_params = [{transform_indices = @transform_0, window_bounds = array<i64: 128, 32>}, {pipeline_mode = #tpu.pipeline_mode<synchronous>, transform_indices = @transform_1, window_bounds = array<i64: 1, 32>}, {transform_indices = @transform_2, window_bounds = array<i64: 32, 128>}, {transform_indices = @transform_3, window_bounds = array<i64: 128, 128>}]} {
    %c0_i32 = arith.constant 0 : i32
    %0 = arith.cmpi eq, %arg1, %c0_i32 : i32
    %1 = arith.extui %0 : i1 to i32
    %c0_i32_0 = arith.constant 0 : i32
    %2 = arith.cmpi ne, %1, %c0_i32_0 : i32
    scf.if %2 {
      %c0_6 = arith.constant 0 : index
      %c0_7 = arith.constant 0 : index
      %7 = vector.load %arg2[%c0_6, %c0_7] : memref<128x32xf32, #tpu.memory_space<vmem>>, vector<128x32xf32>
      %c0_8 = arith.constant 0 : index
      %c0_9 = arith.constant 0 : index
      %8 = vector.load %arg3[%c0_8, %c0_9] : memref<1x32xf32, #tpu.memory_space<vmem>>, vector<1x32xf32>
      %9 = arith.mulf %7, %7 : vector<128x32xf32>
      %cst_10 = arith.constant dense<0.000000e+00> : vector<128xf32>
      %10 = vector.multi_reduction <add>, %9, %cst_10 [1] : vector<128x32xf32> to vector<128xf32>
      %11 = vector.shape_cast %10 : vector<128xf32> to vector<128x1xf32>
      %cst_11 = arith.constant 3.200000e+01 : f32
      %12 = vector.broadcast %cst_11 : f32 to vector<128x1xf32>
      %13 = arith.divf %11, %12 : vector<128x1xf32>
      %cst_12 = arith.constant 1.1920929E-7 : f32
      %14 = vector.broadcast %cst_12 : f32 to vector<128x1xf32>
      %15 = arith.addf %13, %14 : vector<128x1xf32>
      %16 = math.rsqrt %15 : vector<128x1xf32>
      %17 = vector.broadcast %16 : vector<128x1xf32> to vector<128x32xf32>
      %18 = arith.mulf %7, %17 : vector<128x32xf32>
      %19 = vector.broadcast %8 : vector<1x32xf32> to vector<128x32xf32>
      %20 = arith.mulf %18, %19 : vector<128x32xf32>
      %21 = arith.truncf %20 : vector<128x32xf32> to vector<128x32xbf16>
      %c0_13 = arith.constant 0 : index
      %c0_14 = arith.constant 0 : index
      %22 = vector.load %arg6[%c0_13, %c0_14] : memref<128x32xbf16, #tpu.memory_space<vmem>>, vector<128x32xbf16>
      tpu.vector_store %arg6[%c0_13, %c0_14], %21 {strides = array<i32>} : memref<128x32xbf16, #tpu.memory_space<vmem>>, vector<128x32xbf16>,
    } else {
    }
    %c0 = arith.constant 0 : index
    %c0_1 = arith.constant 0 : index
    %3 = vector.load %arg6[%c0, %c0_1] : memref<128x32xbf16, #tpu.memory_space<vmem>>, vector<128x32xbf16>
    %c0_2 = arith.constant 0 : index
    %c0_3 = arith.constant 0 : index
    %4 = vector.load %arg4[%c0_2, %c0_3] : memref<32x128xbf16, #tpu.memory_space<vmem>>, vector<32x128xbf16>
    %cst = arith.constant dense<0.000000e+00> : vector<128x128xf32>
    %5 = tpu.matmul %3, %4, %cst {dimension_numbers = #tpu.dot_dimension_numbers<[1], [0], [0], [1], [0, 0, 1, 1], [], []>} : vector<128x32xbf16>, vector<32x128xbf16>, vector<128x128xf32> -> vector<128x128xf32>
    %c0_4 = arith.constant 0 : index
    %c0_5 = arith.constant 0 : index
    %6 = vector.load %arg5[%c0_4, %c0_5] : memref<128x128xf32, #tpu.memory_space<vmem>>, vector<128x128xf32>
    tpu.vector_store %arg5[%c0_4, %c0_5], %5 {strides = array<i32>} : memref<128x128xf32, #tpu.memory_space<vmem>>, vector<128x128xf32>,
    return
  }
  func.func @transform_0(%arg0: i32, %arg1: i32) -> (i32, i32) {
    %c0_i32 = arith.constant 0 : i32
    %c0_i32_0 = arith.constant 0 : i32
    return %arg0, %c0_i32 : i32, i32
  }
  func.func @transform_1(%arg0: i32, %arg1: i32) -> (i32, i32) {
    %c0_i32 = arith.constant 0 : i32
    %c0_i32_0 = arith.constant 0 : i32
    %c0_i32_1 = arith.constant 0 : i32
    return %c0_i32, %c0_i32_0 : i32, i32
  }
  func.func @transform_2(%arg0: i32, %arg1: i32) -> (i32, i32) {
    %c0_i32 = arith.constant 0 : i32
    %c0_i32_0 = arith.constant 0 : i32
    return %c0_i32, %arg1 : i32, i32
  }
  func.func @transform_3(%arg0: i32, %arg1: i32) -> (i32, i32) {
    %c0_i32 = arith.constant 0 : i32
    return %arg0, %arg1 : i32, i32
  }
}

</mosaic_0001>

<bundles_post_ra>
// kernel: _lambda_.3
= control target key start
LH: loop header
LB: loop body
LE: loop exit
PB: predicated region body
PF: predicated region fallthrough
CT: control target
= control target key end

     0   :  { %s1744_s13 = smov 0   ;;  %s1746_s14 = smov 0   ;;  %s2102_s0 = inlined_call_operand.vmem [shape: f32[2,64,32], index: 0, kind: input, shape index: {}, may-alias: {0,10}]   ;;  %s2103_s1 = inlined_call_operand.vmem [shape: f32[1,32], index: 1, kind: input, shape index: {}, may-alias: {1,5}]   ;;  %s2104_s2 = inlined_call_operand.vmem [shape: bf16[32,128], index: 2, kind: input, shape index: {}]   ;;  %s2105_s3 = inlined_call_operand.vmem [shape: bf16[32,128], index: 3, kind: input, shape index: {}]   ;;  %s2106_s4 = inlined_call_operand.vmem [shape: bf16[128,32], index: 4, kind: input, shape index: {}]   ;;  %s2107_s5 = inlined_call_operand.vmem [shape: f32[1,32], index: 5, kind: input, shape index: {}, may-alias: {1,5}]   ;;  %s2108_s6 = inlined_call_operand.vmem [shape: bf16[32,128], index: 6, kind: input, shape index: {}]   ;;  %s2109_s7 = inlined_call_operand.vmem [shape: f32[1,128], index: 7, kind: input, shape index: {}]   ;;  %s2110_s8 = inlined_call_operand.vmem [shape: bf16[128,32], index: 8, kind: input, shape index: {}]   ;;  %s2111_s9 = inlined_call_operand.vmem [shape: f32[1,32], index: 9, kind: input, shape index: {}]   ;;  %s2112_s10 = inlined_call_operand.vmem [shape: f32[2,64,32], index: 10, kind: output, shape index: {}, may-alias: {0,10}]  }
   0x1   :  { %s1748_s15 = smov 0   ;;  %s1750_s16 = smov 0  }
   0x2   :  { %s1752_s17 = smov 0  }
   0x3 LB: > { %s29_s18 = sadd.s32 1, %s1678_s15  ;;  %s32_s19 = sadd.s32 1, %s1682_s16  ;;  %s1686_s17 = sphi %s1752_s17, %s20_s17   ;;  %s1682_s16 = sphi %s1750_s16, %s2116_s16   ;;  %s1678_s15 = sphi %s1748_s15, %s2115_s15   ;;  %s1674_s14 = sphi %s1746_s14, %s2114_s14   ;;  %s1670_s13 = sphi %s1744_s13, %s2113_s13  }
   0x4   : > { %p30_p0 = scmp.ge.s32.totalorder %s29_s18, 2  ;;  %p1382_p1 = scmp.ge.s32.totalorder %s1686_s17, 1 }
   0x5   : > { %p333_p2 = scmp.lt.s32.totalorder %s1686_s17, 5 }
   0x6   : > { %s2118_s18 = smov (%p30_p0, %s29_s18), 0  ;;  %s2120_s19 = smov (!%p30_p0, %s32_s19), %s1682_s16 }
   0x7   : > { %p334_p3 = pnand %p1382_p1, %p333_p2  ;;  %p34_p4 = scmp.ge.s32.totalorder %s2120_s19, 2 }
   0x8   : > { %s1383_s20 = sshll.u32 (!%p334_p3), %s1670_s13, 2  ;;  %p380_p5 = scmp.lt.s32.totalorder (!%p334_p3), %s1674_s14, 1 }
   0x9   : > { %s2122_s19 = smov (%p34_p4, %s2120_s19), 0  ;;  %337 = sbr.rel (%p334_p3) target bundleno = 1337 (0x539), region = 60 }
   0xa   : > { %p382_p6 = scmp.lt.s32.totalorder (!%p334_p3), %s1383_s20, 7  ;;  %p1389_p7 = scmp.ne.s32.totalorder (!%p334_p3), %s1670_s13, 0 }
  0x10   : > { %s2124_s14 = smov (!%p380_p5, %s1674_s14), 1  ;;  %s2126_s20 = smov (!%p382_p6, %s1383_s20), 7 }
  0x11   : > { %s1384_s21 = sshll.u32 %s2124_s14, 3  ;;  %403 = sbr.rel (%p1389_p7) target bundleno = 24 (0x18), region = 64  ;;  %v1688_v0 = vmov (!%p1389_p7), 0.0  }
  0x12   : > { %s385_s22 = sadd.s32 %s1384_s21, %s2126_s20  ;;  %404 = vst [vmem:[#allocation2] sm:$0x1] (!%p1389_p7), %v1688_v0 }
  0x13   : > { %s1385_s23 = sshll.u32 %s385_s22, 3 }
  0x14   : > { %s387_s26 = scalar_lea.vmem %s2102_s0, %s1385_s23  ;;  %s1780_s29 = scalar_lea.vmem %s2112_s10, %s1385_s23 }
  0x18 PF: > { %v1782_v1 = vld [vmem:[%s387_s26 + $0x10] sm:$0xff]  ;;  %vm414_vm0 = vcmask 261120   ;;  %v1784_v2 = vld [vmem:[%s387_s26] sm:$0xff]  ;;  %v1786_v3 = vld [vmem:[%s387_s26 + $0x18] sm:$0xff] }
  0x19   : > { %v412_v4 = vmul.f32 %v1782_v1, %v1782_v1  ;;  %v410_v5 = vmul.f32 %v1784_v2, %v1784_v2  ;;  %v413_v6 = vmul.f32 %v1786_v3, %v1786_v3  ;;  %v1794_v7 = vld [vmem:[%s387_s26 + $0x8] sm:$0xff]  ;;  %v1570_v13 = vld [vmem:[%s2104_s2] sm:$0xff]   ;;  %v1576_v46 = vld [vmem:[%s2106_s4 + $0x10] sm:$0xff]  }
  0x1a   : > { %v411_v8 = vmul.f32 %v1794_v7, %v1794_v7  ;;  %v1571_v14 = vld [vmem:[%s2105_s3] sm:$0xff]   ;;  %v1572_v15 = vld [vmem:[%s2104_s2 + $0x8] sm:$0xff]   ;;  %1465 = vmatprep.subr.bf16.mxu0 %v1570_v13  ;;  %v1577_v47 = vld [vmem:[%s2106_s4 + $0x18] sm:$0xff]  }
  0x1b   : > { %v421_v9 = vsel %vm414_vm0, %v412_v4, 0.0  ;;  %v415_v10 = vsel %vm414_vm0, %v410_v5, 0.0  ;;  %v424_v11 = vsel %vm414_vm0, %v413_v6, 0.0  ;;  %v1573_v16 = vld [vmem:[%s2105_s3 + $0x8] sm:$0xff]   ;;  %1473 = vmatprep.subr.bf16.mxu1 %v1571_v14  ;;  %1466 = vmatpush3.bf16.msra.mxu0 %v1570_v13  ;;  %v1390_v33 = vld [vmem:[%s2103_s1] ss:$0 sm:$0xff] }
  0x1c   : > { %422 = vadd.xlane.f32.xlu1 %v421_v9  ;;  %416 = vadd.xlane.f32.xlu0 %v415_v10  ;;  %v418_v12 = vsel %vm414_vm0, %v411_v8, 0.0  ;;  %v1574_v44 = vld [vmem:[%s2106_s4] sm:$0xff]   ;;  %v1575_v45 = vld [vmem:[%s2106_s4 + $0x8] sm:$0xff]   ;;  %v1580_v50 = vld [vmem:[%s2106_s4 + $0x30] sm:$0xff]  }
  0x1d   : > { %1474 = vmatpush3.bf16.msra.mxu1 %v1571_v14  ;;  %1467 = vmatprep.subr.bf16.mxu0 %v1572_v15  ;;  %v1578_v48 = vld [vmem:[%s2106_s4 + $0x20] sm:$0xff]   ;;  %v1579_v49 = vld [vmem:[%s2106_s4 + $0x28] sm:$0xff]   ;;  %v1581_v51 = vld [vmem:[%s2106_s4 + $0x38] sm:$0xff]  }
  0x1e   : > { %1475 = vmatprep.subr.bf16.mxu1 %v1573_v16 }
  0x1f   : > { %1468 = vmatpush3.bf16.msra.mxu0 %v1572_v15 }
  0x20   : > { %425 = vadd.xlane.f32.xlu1 %v424_v11  ;;  %419 = vadd.xlane.f32.xlu0 %v418_v12  ;;  %v665_v12 = vlaneseq }
  0x21   : > { %1476 = vmatpush3.bf16.msra.mxu1 %v1573_v16  ;;  %1481 = vmatprep.subr.bf16.mxu0 %v1574_v44 }
  0xa9   : > { %v423_v17 = vpop.xlane.xlu1 %422  ;;  %v417_v18 = vpop.xlane.xlu0 %416 }
  0xaa   : > { %v430_v19 = vmul.f32 0.03125, %v423_v17  ;;  %v428_v20 = vmul.f32 0.03125, %v417_v18 }
  0xac   : > { %v434_v21 = vadd.f32 1.1920929e-07, %v430_v19  ;;  %v432_v22 = vadd.f32 1.1920929e-07, %v428_v20  ;;  %v1861_v20 = vshrl.u32 %v665_v12, 7 }
  0xad   : > { %v426_v23 = vpop.xlane.xlu1 %425  ;;  %v420_v24 = vpop.xlane.xlu0 %419 }
  0xae   : > { %1592 = vrsqrt.f32 %v434_v21  ;;  %v431_v25 = vmul.f32 0.03125, %v426_v23  ;;  %v429_v26 = vmul.f32 0.03125, %v420_v24  ;;  %vm726_vm1 = vcmp.lt.s32.totalorder %v1861_v20, 1 }
  0xaf   : > { %1594 = vrsqrt.f32 %v432_v22  ;;  %vm775_vm14 = vcmp.lt.s32.totalorder %v1861_v20, 2 }
  0xb0   : > { %v435_v27 = vadd.f32 1.1920929e-07, %v431_v25  ;;  %v433_v28 = vadd.f32 1.1920929e-07, %v429_v26 }
  0xb2   : > { %1596 = vrsqrt.f32 %v435_v27 }
  0xb3   : > { %1598 = vrsqrt.f32 %v433_v28 }
  0xb8   : > { %v1593_v29 = vpop.eup %1592 }
  0xb9   : > { %v1595_v30 = vpop.eup %1594  ;;  %v442_v31 = vmul.f32 %v1593_v29, %v1782_v1  ;;  %v667_v29 = vadd.s32 8, %v1861_v20 }
  0xba   : > { %v440_v34 = vmul.f32 %v1595_v30, %v1784_v2  ;;  %v669_v30 = vadd.s32 24, %v1861_v20 }
  0xbb   : > { %v452_v38 = vmul.f32 %v1390_v33, %v442_v31 }
  0xbc   : > { %v1597_v32 = vpop.eup %1596  ;;  %v450_v40 = vmul.f32 %v1390_v33, %v440_v34  ;;  %v1869_v34 = vand.u32 7, %v667_v29 }
  0xbd   : > { %v1599_v35 = vpop.eup %1598  ;;  %v443_v36 = vmul.f32 %v1597_v32, %v1786_v3  ;;  %v668_v32 = vadd.s32 16, %v1861_v20 }
  0xbe   : > { %v441_v37 = vmul.f32 %v1599_v35, %v1794_v7  ;;  %v1871_v35 = vand.u32 7, %v669_v30  ;;  %vm719_vm3 = vcmp.lt.s32.totalorder %v1869_v34, 1  ;;  %vm768_vm10 = vcmp.lt.s32.totalorder %v1869_v34, 2 }
  0xbf   : > { %v453_v39 = vmul.f32 %v1390_v33, %v443_v36 }
  0xc0   : > { %v451_v41 = vmul.f32 %v1390_v33, %v441_v37  ;;  %v1867_v33 = vand.u32 7, %v1861_v20  ;;  %vm721_vm4 = vcmp.lt.s32.totalorder %v1871_v35, 1  ;;  %vm770_vm13 = vcmp.lt.s32.totalorder %v1871_v35, 2 }
  0xc1   : > { %v455_v42 = vpack.c.bf16 %v453_v39, %v452_v38  ;;  %v1873_v38 = vand.u32 7, %v668_v32 }
  0xc2   : > { %v454_v43 = vpack.c.bf16 %v451_v41, %v450_v40  ;;  %vm718_vm2 = vcmp.lt.s32.totalorder %v1867_v33, 1  ;;  %vm767_vm12 = vcmp.lt.s32.totalorder %v1867_v33, 2  ;;  %vm816_vm15 = vcmp.lt.s32.totalorder %v1867_v33, 4 }
  0xc3   : > { %vm720_vm9 = vcmp.lt.s32.totalorder %v1873_v38, 1  ;;  %vm769_vm11 = vcmp.lt.s32.totalorder %v1873_v38, 2 }
  0xc4   : > { %1469 = vmatprep.mubr.msk.bf16.mxu0 %vm414_vm0, %v454_v43  ;;  %1477 = vmatprep.mubr.msk.bf16.mxu1 %vm414_vm0, %v454_v43 }
  0xc5   : > { %1470 = vmatmul.mubr.msk.bf16.vlgmr.msra.gmra.mrb[0].mxu0 %vm414_vm0, %v455_v42  ;;  %1478 = vmatmul.mubr.msk.bf16.vlgmr.msra.gmra.mrb[0].mxu1 %vm414_vm0, %v455_v42 }
  0xc6   : > { %1482 = vmatpush3.bf16.msra.mxu0 %v1574_v44 }
  0xc7   : > { %1483 = vmatprep.subr.bf16.mxu0 %v1575_v45 }
  0xca   : > { %1484 = vmatpush3.bf16.msra.mxu0 %v1575_v45 }
  0xcb   : > { %1485 = vmatprep.subr.bf16.mxu0 %v1576_v46 }
  0xce   : > { %1486 = vmatpush3.bf16.msra.mxu0 %v1576_v46 }
  0xcf   : > { %1487 = vmatprep.subr.bf16.mxu0 %v1577_v47 }
  0xd2   : > { %1488 = vmatpush3.bf16.msra.mxu0 %v1577_v47 }
  0xd3   : > { %1489 = vmatprep.subr.bf16.mxu0 %v1578_v48 }
  0xd6   : > { %1490 = vmatpush3.bf16.msra.mxu0 %v1578_v48 }
  0xd7   : > { %1491 = vmatprep.subr.bf16.mxu0 %v1579_v49 }
  0xda   : > { %1492 = vmatpush3.bf16.msra.mxu0 %v1579_v49 }
  0xdb   : > { %1493 = vmatprep.subr.bf16.mxu0 %v1580_v50 }
  0xde   : > { %1494 = vmatpush3.bf16.msra.mxu0 %v1580_v50 }
  0xdf   : > { %1495 = vmatprep.subr.bf16.mxu0 %v1581_v51 }
  0xe2   : > { %1496 = vmatpush3.bf16.msra.mxu0 %v1581_v51 }
 0x198   : > { %v1849_v52 = vpop.f32.mrb[0].mxu0  ;;  %v1479_v53 = vpop.f32.mrb[0].mxu1 }
 0x199   : > { %v1405_v54 = vmul.f32 -1.442695, %v1849_v52  ;;  %v594_v55 = vsub.f32 0.0, %v1479_v53  ;;  %v1852_v56 = vpop.f32.mrb[1].mxu0  ;;  %v577_v58 = vpop.f32.mrb[1].mxu1  ;;  %v630_v40 = vadd.f32 0.5, %v1849_v52 }
 0x19a   : > { %v1403_v57 = vmul.f32 -1.442695, %v1852_v56  ;;  %v1855_v59 = vpop.f32.mrb[2].mxu0  ;;  %v592_v61 = vsub.f32 0.0, %v577_v58  ;;  %v1480_v62 = vpop.f32.mrb[2].mxu1  ;;  %vm626_vm5 = vcmp.ge.f32.partialorder %v1849_v52, 0.0 }
 0x19b   : > { %1600 = vpow2.f32 %v1405_v54  ;;  %v1401_v60 = vmul.f32 -1.442695, %v594_v55  ;;  %v1857_v63 = vpop.f32.mrb[3].mxu0  ;;  %v1406_v0 = vmul.f32 -1.442695, %v1855_v59  ;;  %v595_v4 = vsub.f32 0.0, %v1480_v62 }
 0x19c   : > { %1602 = vpow2.f32 %v1403_v57  ;;  %v580_v5 = vpop.f32.mrb[3].mxu1  ;;  %v1399_v6 = vmul.f32 -1.442695, %v592_v61  ;;  %v1404_v9 = vmul.f32 -1.442695, %v1857_v63  ;;  %vm624_vm6 = vcmp.ge.f32.partialorder %v1852_v56, 0.0 }
 0x19d   : > { %1604 = vpow2.f32 %v1401_v60  ;;  %v1402_v8 = vmul.f32 -1.442695, %v595_v4  ;;  %v593_v10 = vsub.f32 0.0, %v580_v5  ;;  %v628_v42 = vadd.f32 0.5, %v1852_v56 }
 0x19e   : > { %1606 = vpow2.f32 %v1406_v0  ;;  %vm627_vm7 = vcmp.ge.f32.partialorder %v1855_v59, 0.0  ;;  %v631_v46 = vadd.f32 0.5, %v1855_v59  ;;  %vm625_vm8 = vcmp.ge.f32.partialorder %v1857_v63, 0.0 }
 0x19f   : > { %1608 = vpow2.f32 %v1399_v6  ;;  %v1400_v11 = vmul.f32 -1.442695, %v593_v10  ;;  %v629_v48 = vadd.f32 0.5, %v1857_v63 }
 0x1a0   : > { %1610 = vpow2.f32 %v1402_v8 }
 0x1a1   : > { %1612 = vpow2.f32 %v1404_v9 }
 0x1a2   : > { %1614 = vpow2.f32 %v1400_v11 }
 0x1a5   : > { %v1601_v13 = vpop.eup %1600 }
 0x1a6   : > { %v1603_v14 = vpop.eup %1602  ;;  %v646_v15 = vadd.f32 1.0, %v1601_v13 }
 0x1a7   : > { %v1605_v16 = vpop.eup %1604  ;;  %v644_v17 = vadd.f32 1.0, %v1603_v14 }
 0x1a8   : > { %v1607_v18 = vpop.eup %1606  ;;  %1616 = vrcp.f32 %v646_v15  ;;  %v610_v19 = vadd.f32 1.0, %v1605_v16 }
 0x1a9   : > { %v1609_v21 = vpop.eup %1608  ;;  %1618 = vrcp.f32 %v644_v17  ;;  %v647_v22 = vadd.f32 1.0, %v1607_v18 }
 0x1aa   : > { %v1611_v23 = vpop.eup %1610  ;;  %1620 = vrcp.f32 %v610_v19  ;;  %v608_v24 = vadd.f32 1.0, %v1609_v21 }
 0x1ab   : > { %v1613_v25 = vpop.eup %1612  ;;  %1622 = vrcp.f32 %v647_v22  ;;  %v611_v26 = vadd.f32 1.0, %v1611_v23 }
 0x1ac   : > { %v1615_v27 = vpop.eup %1614  ;;  %1624 = vrcp.f32 %v608_v24  ;;  %v645_v28 = vadd.f32 1.0, %v1613_v25 }
 0x1ad   : > { %1626 = vrcp.f32 %v611_v26  ;;  %v609_v31 = vadd.f32 1.0, %v1615_v27 }
 0x1ae   : > { %1628 = vrcp.f32 %v645_v28 }
 0x1af   : > { %1630 = vrcp.f32 %v609_v31 }
 0x1b2   : > { %v1617_v36 = vpop.eup %1616 }
 0x1b3   : > { %v1619_v37 = vpop.eup %1618  ;;  %v658_v45 = vsel %vm626_vm5, %v630_v40, %v1617_v36 }
 0x1b4   : > { %v1876_v39 = vpop.eup %1620  ;;  %v656_v53 = vsel %vm624_vm6, %v628_v42, %v1619_v37 }
 0x1b5   : > { %v1623_v41 = vpop.eup %1622  ;;  %v622_v43 = vsub.f32 1.0, %v1876_v39  ;;  %v724_v55 = vrot.slane %v1876_v39, 7 }
 0x1b6   : > { %v1625_v44 = vpop.eup %1624  ;;  %v659_v58 = vsel %vm627_vm7, %v631_v46, %v1623_v41 }
 0x1b7   : > { %v1627_v47 = vpop.eup %1626  ;;  %v620_v49 = vsub.f32 1.0, %v1625_v44  ;;  %v662_v50 = vmul.f32 %v658_v45, %v622_v43  ;;  %v722_v51 = vrot.slane %v1625_v44, 7 }
 0x1b8   : > { %v1629_v52 = vpop.eup %1628  ;;  %v623_v54 = vsub.f32 1.0, %v1627_v47  ;;  %v725_v56 = vrot.slane %v1627_v47, 7 }
 0x1b9   : > { %v1631_v57 = vpop.eup %1630  ;;  %v657_v60 = vsel %vm625_vm8, %v629_v48, %v1629_v52  ;;  %v660_v61 = vmul.f32 %v656_v53, %v620_v49  ;;  %v745_v8 = vrot.slane %v662_v50, 7 }
 0x1ba   : > { %v621_v59 = vsub.f32 1.0, %v1631_v57  ;;  %v663_v62 = vmul.f32 %v659_v58, %v623_v54  ;;  %v723_v0 = vrot.slane %v1631_v57, 7  ;;  %v727_v63 = vsel %vm726_vm1, %v724_v55, %v725_v56 }
 0x1bb   : > { %v730_v4 = vsel %vm726_vm1, %v725_v56, %v722_v51  ;;  %v742_v5 = vsel %vm721_vm4, 1.0, %v727_v63  ;;  %v743_v6 = vrot.slane %v660_v61, 7 }
 0x1bc   : > { %v661_v9 = vmul.f32 %v657_v60, %v621_v59  ;;  %v728_v10 = vsel %vm726_vm1, %v723_v0, %v724_v55  ;;  %v729_v11 = vsel %vm726_vm1, %v722_v51, %v723_v0  ;;  %v739_v12 = vsel %vm718_vm2, 1.0, %v730_v4 }
 0x1bd   : > { %v740_v13 = vsel %vm719_vm3, 1.0, %v729_v11  ;;  %v741_v14 = vsel %vm720_vm9, 1.0, %v728_v10  ;;  %v746_v15 = vrot.slane %v663_v62, 7  ;;  %v763_v16 = vmul.f32 %v1625_v44, %v739_v12 }
 0x1be   : > { %v744_v17 = vrot.slane %v661_v9, 7  ;;  %v764_v18 = vmul.f32 %v1631_v57, %v740_v13  ;;  %v1913_v19 = vmul.f32 %v1876_v39, %v741_v14  ;;  %v766_v21 = vmul.f32 %v1627_v47, %v742_v5 }
 0x1bf   : > { %v747_v22 = vsel %vm726_vm1, %v745_v8, %v746_v15  ;;  %v750_v23 = vsel %vm726_vm1, %v746_v15, %v743_v6  ;;  %v771_v24 = vrot.slane %v763_v16, 6 }
 0x1c0   : > { %v748_v25 = vsel %vm726_vm1, %v744_v17, %v745_v8  ;;  %v749_v26 = vsel %vm726_vm1, %v743_v6, %v744_v17  ;;  %v751_v27 = vsel %vm718_vm2, 0.0, %v750_v23  ;;  %v754_v28 = vsel %vm721_vm4, 0.0, %v747_v22 }
 0x1c1   : > { %v752_v29 = vsel %vm719_vm3, 0.0, %v749_v26  ;;  %v753_v30 = vsel %vm720_vm9, 0.0, %v748_v25  ;;  %v755_v31 = vmul.f32 %v1625_v44, %v751_v27  ;;  %v758_v32 = vmul.f32 %v1627_v47, %v754_v28 }
 0x1c2   : > { %v756_v36 = vmul.f32 %v1631_v57, %v752_v29  ;;  %v757_v37 = vmul.f32 %v1876_v39, %v753_v30  ;;  %v772_v40 = vrot.slane %v764_v18, 6  ;;  %v773_v41 = vrot.slane %v1913_v19, 6 }
 0x1c3   : > { %v759_v42 = vadd.f32 %v755_v31, %v660_v61  ;;  %v762_v43 = vadd.f32 %v758_v32, %v663_v62  ;;  %v774_v45 = vrot.slane %v766_v21, 6  ;;  %vm817_vm1 = vcmp.lt.s32.totalorder %v1869_v34, 4 }
 0x1c4   : > { %vm818_vm2 = vcmp.lt.s32.totalorder %v1873_v38, 4  ;;  %v760_v46 = vadd.f32 %v756_v36, %v661_v9  ;;  %v761_v48 = vadd.f32 %v757_v37, %v662_v50  ;;  %v777_v44 = vsel %vm775_vm14, %v772_v40, %v773_v41 }
 0x1c5   : > { %v778_v39 = vsel %vm775_vm14, %v771_v24, %v772_v40  ;;  %v776_v47 = vsel %vm775_vm14, %v773_v41, %v774_v45  ;;  %v779_v49 = vsel %vm775_vm14, %v774_v45, %v771_v24  ;;  %v790_v52 = vsel %vm769_vm11, 1.0, %v777_v44 }
 0x1c6   : > { %v789_v51 = vsel %vm768_vm10, 1.0, %v778_v39  ;;  %v788_v50 = vsel %vm767_vm12, 1.0, %v779_v49  ;;  %v791_v53 = vsel %vm770_vm13, 1.0, %v776_v47  ;;  %v792_v54 = vrot.slane %v759_v42, 6 }
 0x1c7   : > { %v793_v55 = vrot.slane %v760_v46, 6  ;;  %v794_v56 = vrot.slane %v761_v48, 6  ;;  %v795_v57 = vrot.slane %v762_v43, 6  ;;  %v812_v58 = vmul.f32 %v788_v50, %v763_v16 }
 0x1c8   : > { %v813_v60 = vmul.f32 %v789_v51, %v764_v18  ;;  %v814_v59 = vmul.f32 %v790_v52, %v1913_v19  ;;  %v815_v62 = vmul.f32 %v791_v53, %v766_v21  ;;  %vm824_vm3 = vcmp.lt.s32.totalorder %v1861_v20, 4 }
 0x1c9   : > { %v798_v61 = vsel %vm775_vm14, %v792_v54, %v793_v55  ;;  %v796_v0 = vsel %vm775_vm14, %v794_v56, %v795_v57  ;;  %v799_v63 = vsel %vm775_vm14, %v795_v57, %v792_v54  ;;  %v820_v5 = vrot.slane %v812_v58, 4 }
 0x1ca   : > { %v801_v4 = vsel %vm768_vm10, 0.0, %v798_v61  ;;  %v800_v6 = vsel %vm767_vm12, 0.0, %v799_v63  ;;  %v803_v8 = vsel %vm770_vm13, 0.0, %v796_v0  ;;  %v821_v10 = vrot.slane %v813_v60, 4 }
 0x1cb   : > { %v805_v9 = vmul.f32 %v801_v4, %v764_v18  ;;  %v804_v11 = vmul.f32 %v800_v6, %v763_v16  ;;  %v807_v12 = vmul.f32 %v803_v8, %v766_v21  ;;  %v822_v13 = vrot.slane %v814_v59, 4 }
 0x1cc   : > { %v823_v14 = vrot.slane %v815_v62, 4  ;;  %v827_v17 = vsel %vm824_vm3, %v820_v5, %v821_v10  ;;  %v797_v22 = vsel %vm775_vm14, %v793_v55, %v794_v56  ;;  %vm819_vm4 = vcmp.lt.s32.totalorder %v1871_v35, 4 }
 0x1cd   : > { %v809_v15 = vadd.f32 %v805_v9, %v760_v46  ;;  %v808_v23 = vadd.f32 %v804_v11, %v759_v42  ;;  %v811_v24 = vadd.f32 %v807_v12, %v762_v43  ;;  %v826_v25 = vsel %vm824_vm3, %v821_v10, %v822_v13  ;;  %v1407_v43 = vld [vmem:[#allocation2] ss:$0 sm:$0xff] }
 0x1ce   : > { %v828_v16 = vsel %vm824_vm3, %v823_v14, %v820_v5  ;;  %v838_v21 = vsel %vm817_vm1, 1.0, %v827_v17  ;;  %v839_v26 = vsel %vm818_vm2, 1.0, %v826_v25  ;;  %v802_v36 = vsel %vm769_vm11, 0.0, %v797_v22 }
 0x1cf   : > { %v837_v18 = vsel %vm816_vm15, 1.0, %v828_v16  ;;  %v842_v27 = vrot.slane %v809_v15, 4  ;;  %v841_v28 = vrot.slane %v808_v23, 4  ;;  %v844_v29 = vrot.slane %v811_v24, 4  ;;  %v1582_v16 = vld [vmem:[%s2108_s6] sm:$0xff]  }
 0x1d0   : > { %v861_v30 = vmul.f32 %v837_v18, %v812_v58  ;;  %v862_v31 = vmul.f32 %v838_v21, %v813_v60  ;;  %v863_v32 = vmul.f32 %v839_v26, %v814_v59  ;;  %v825_v37 = vsel %vm824_vm3, %v822_v13, %v823_v14  ;;  %v1583_v18 = vld [vmem:[%s2108_s6 + $0x8] sm:$0xff]   ;;  %1501 = vmatprep.subr.bf16.mxu1 %v1582_v16  ;;  %v1584_v21 = vld [vmem:[%s2110_s8] sm:$0xff]  }
 0x1d1   : > { %v847_v40 = vsel %vm824_vm3, %v841_v28, %v842_v27  ;;  %v848_v41 = vsel %vm824_vm3, %v844_v29, %v841_v28  ;;  %v806_v42 = vmul.f32 %v802_v36, %v1913_v19  ;;  %v840_v44 = vsel %vm819_vm4, 1.0, %v825_v37  ;;  %1502 = vmatpush3.bf16.msra.mxu1 %v1582_v16 }
 0x1d2   : > { %v849_v45 = vsel %vm816_vm15, 0.0, %v848_v41  ;;  %v850_v46 = vsel %vm817_vm1, 0.0, %v847_v40  ;;  %v864_v51 = vmul.f32 %v840_v44, %v815_v62  ;;  %v875_v52 = vsub.s32 7, %v1861_v20  ;;  %1503 = vmatprep.subr.bf16.mxu1 %v1583_v18  ;;  %v1416_v44 = vld [vmem:[%s2107_s5] ss:$0 sm:$0xff] }
 0x1d3   : > { %v853_v39 = vmul.f32 %v849_v45, %v812_v58  ;;  %v854_v47 = vmul.f32 %v850_v46, %v813_v60  ;;  %v810_v49 = vadd.f32 %v806_v42, %v761_v48  ;;  %v871_v54 = vmul.f32 %v1407_v43, %v861_v30 }
 0x1d5   : > { %v857_v50 = vadd.f32 %v853_v39, %v808_v23  ;;  %v858_v53 = vadd.f32 %v854_v47, %v809_v15  ;;  %v843_v19 = vrot.slane %v810_v49, 4  ;;  %1504 = vmatpush3.bf16.msra.mxu1 %v1583_v18 }
 0x1d6   : > { %1509 = vmatprep.subr.bf16.mxu1 %v1584_v21 }
 0x1d7   : > { %v872_v55 = vadd.f32 %v871_v54, %v857_v50  ;;  %v845_v33 = vsel %vm824_vm3, %v843_v19, %v844_v29  ;;  %v846_v34 = vsel %vm824_vm3, %v842_v27, %v843_v19 }
 0x1d8   : > { %v851_v56 = vsel %vm818_vm2, 0.0, %v846_v34  ;;  %v852_v48 = vsel %vm819_vm4, 0.0, %v845_v33  ;;  %v1585_v34 = vld [vmem:[%s2110_s8 + $0x8] sm:$0xff]  }
 0x1d9   : > { %v876_v57 = vrot.slane %v872_v55, %v875_v52  ;;  %v855_v58 = vmul.f32 %v851_v56, %v814_v59  ;;  %v856_v60 = vmul.f32 %v852_v48, %v815_v62  ;;  %v1586_v56 = vld [vmem:[%s2110_s8 + $0x10] sm:$0xff]   ;;  %v1587_v48 = vld [vmem:[%s2110_s8 + $0x18] sm:$0xff]  }
 0x1db   : > { %v877_v61 = vmul.f32 %v876_v57, %v862_v31  ;;  %v859_v0 = vadd.f32 %v855_v58, %v810_v49  ;;  %v860_v63 = vadd.f32 %v856_v60, %v811_v24  ;;  %v1588_v57 = vld [vmem:[%s2110_s8 + $0x20] sm:$0xff]   ;;  %v1589_v58 = vld [vmem:[%s2110_s8 + $0x28] sm:$0xff]   ;;  %v1590_v60 = vld [vmem:[%s2110_s8 + $0x30] sm:$0xff]  }
 0x1dd   : > { %v878_v4 = vadd.f32 %v877_v61, %v858_v53  ;;  %v1591_v61 = vld [vmem:[%s2110_s8 + $0x38] sm:$0xff]  }
 0x1df   : > { %v882_v5 = vrot.slane %v878_v4, %v875_v52  ;;  %v892_v6 = vpack.c.bf16 %v878_v4, %v872_v55 }
 0x1e1   : > { %v883_v8 = vmul.f32 %v882_v5, %v863_v32  ;;  %1497 = vmatprep.mubr.bf16.mxu0 %v892_v6 }
 0x1e3   : > { %v884_v9 = vadd.f32 %v883_v8, %v859_v0  ;;  %v1417_v0 = vld [vmem:[%s2109_s7] ss:$0 sm:$0xff] }
 0x1e5   : > { %v888_v20 = vrot.slane %v884_v9, %v875_v52 }
 0x1e7   : > { %v889_v10 = vmul.f32 %v888_v20, %v864_v51 }
 0x1e9   : > { %v890_v11 = vadd.f32 %v889_v10, %v860_v63 }
 0x1eb   : > { %891 = vst [vmem:[#allocation2 - $0x7] sm:$0x80] %v890_v11  ;;  %v893_v38 = vpack.c.bf16 %v890_v11, %v884_v9 }
 0x1ed   : > { %1498 = vmatmul.mubr.bf16.vlgmr.msra.gmra.mrb[4].mxu0 %v893_v38 }
 0x2c0   : > { %v1499_v35 = vpop.f32.mrb[4].mxu0 }
 0x2c1   : > { %v992_v12 = vpop.f32.mrb[5].mxu0  ;;  %v2007_v59 = vadd.f32 %v1499_v35, %v1782_v1 }
 0x2c2   : > { %v2010_v62 = vadd.f32 %v992_v12, %v1784_v2  ;;  %v1500_v13 = vpop.f32.mrb[6].mxu0 }
 0x2c3   : > { %v995_v14 = vpop.f32.mrb[7].mxu0  ;;  %v2013_v15 = vadd.f32 %v1500_v13, %v1786_v3  ;;  %v1014_v2 = vmul.f32 %v2007_v59, %v2007_v59 }
 0x2c4   : > { %v2016_v17 = vadd.f32 %v995_v14, %v1794_v7  ;;  %v1012_v22 = vmul.f32 %v2010_v62, %v2010_v62 }
 0x2c5   : > { %v1015_v3 = vmul.f32 %v2013_v15, %v2013_v15  ;;  %v1022_v7 = vsel %vm414_vm0, %v1014_v2, 0.0 }
 0x2c6   : > { %v1016_v23 = vsel %vm414_vm0, %v1012_v22, 0.0  ;;  %v1013_v1 = vmul.f32 %v2016_v17, %v2016_v17 }
 0x2c7   : > { %1017 = vadd.xlane.f32.xlu0 %v1016_v23  ;;  %v1025_v25 = vsel %vm414_vm0, %v1015_v3, 0.0 }
 0x2c8   : > { %v1019_v24 = vsel %vm414_vm0, %v1013_v1, 0.0 }
 0x2c9   : > { %1020 = vadd.xlane.f32.xlu1 %v1019_v24 }
 0x2cb   : > { %1023 = vadd.xlane.f32.xlu0 %v1022_v7 }
 0x2cd   : > { %1026 = vadd.xlane.f32.xlu1 %v1025_v25 }
 0x354   : > { %v1018_v26 = vpop.xlane.xlu0 %1017 }
 0x355   : > { %v1028_v27 = vmul.f32 0.03125, %v1018_v26 }
 0x356   : > { %v1021_v28 = vpop.xlane.xlu1 %1020 }
 0x357   : > { %v1032_v29 = vadd.f32 1.1920929e-07, %v1028_v27  ;;  %v1029_v30 = vmul.f32 0.03125, %v1021_v28 }
 0x358   : > { %v1024_v31 = vpop.xlane.xlu0 %1023 }
 0x359   : > { %1632 = vrsqrt.f32 %v1032_v29  ;;  %v1033_v32 = vadd.f32 1.1920929e-07, %v1029_v30  ;;  %v1030_v36 = vmul.f32 0.03125, %v1024_v31 }
 0x35a   : > { %v1027_v37 = vpop.xlane.xlu1 %1026 }
 0x35b   : > { %1634 = vrsqrt.f32 %v1033_v32  ;;  %v1034_v40 = vadd.f32 1.1920929e-07, %v1030_v36  ;;  %v1031_v41 = vmul.f32 0.03125, %v1027_v37  ;;  %v1430_v32 = vld [vmem:[%s2111_s9] ss:$0 sm:$0xff] }
 0x35d   : > { %1636 = vrsqrt.f32 %v1034_v40  ;;  %v1035_v42 = vadd.f32 1.1920929e-07, %v1031_v41 }
 0x35f   : > { %1638 = vrsqrt.f32 %v1035_v42 }
 0x363   : > { %v1633_v43 = vpop.eup %1632 }
 0x364   : > { %v1040_v45 = vmul.f32 %v1633_v43, %v2010_v62 }
 0x365   : > { %v1635_v46 = vpop.eup %1634 }
 0x366   : > { %v1041_v39 = vmul.f32 %v1635_v46, %v2016_v17  ;;  %v1050_v51 = vmul.f32 %v1416_v44, %v1040_v45 }
 0x367   : > { %v1637_v47 = vpop.eup %1636 }
 0x368   : > { %v1042_v49 = vmul.f32 %v1637_v47, %v2007_v59  ;;  %v1051_v52 = vmul.f32 %v1416_v44, %v1041_v39 }
 0x369   : > { %v1639_v50 = vpop.eup %1638 }
 0x36a   : > { %v1043_v53 = vmul.f32 %v1639_v50, %v2013_v15  ;;  %v1054_v54 = vpack.c.bf16 %v1051_v52, %v1050_v51  ;;  %v1052_v19 = vmul.f32 %v1416_v44, %v1042_v49 }
 0x36c   : > { %1505 = vmatprep.mubr.msk.bf16.mxu1 %vm414_vm0, %v1054_v54  ;;  %v1053_v55 = vmul.f32 %v1416_v44, %v1043_v53 }
 0x36e   : > { %v1055_v33 = vpack.c.bf16 %v1053_v55, %v1052_v19 }
 0x370   : > { %1506 = vmatmul.mubr.msk.bf16.vlgmr.msra.gmra.mrb[4].mxu1 %vm414_vm0, %v1055_v33 }
 0x371   : > { %1510 = vmatpush3.bf16.msra.mxu1 %v1584_v21 }
 0x372   : > { %1511 = vmatprep.subr.bf16.mxu1 %v1585_v34 }
 0x375   : > { %1512 = vmatpush3.bf16.msra.mxu1 %v1585_v34 }
 0x376   : > { %1513 = vmatprep.subr.bf16.mxu1 %v1586_v56 }
 0x379   : > { %1514 = vmatpush3.bf16.msra.mxu1 %v1586_v56 }
 0x37a   : > { %1515 = vmatprep.subr.bf16.mxu1 %v1587_v48 }
 0x37d   : > { %1516 = vmatpush3.bf16.msra.mxu1 %v1587_v48 }
 0x37e   : > { %1517 = vmatprep.subr.bf16.mxu1 %v1588_v57 }
 0x381   : > { %1518 = vmatpush3.bf16.msra.mxu1 %v1588_v57 }
 0x382   : > { %1519 = vmatprep.subr.bf16.mxu1 %v1589_v58 }
 0x385   : > { %1520 = vmatpush3.bf16.msra.mxu1 %v1589_v58 }
 0x386   : > { %1521 = vmatprep.subr.bf16.mxu1 %v1590_v60 }
 0x389   : > { %1522 = vmatpush3.bf16.msra.mxu1 %v1590_v60 }
 0x38a   : > { %1523 = vmatprep.subr.bf16.mxu1 %v1591_v61 }
 0x38d   : > { %1524 = vmatpush3.bf16.msra.mxu1 %v1591_v61 }
 0x443   : > { %v1507_v63 = vpop.f32.mrb[4].mxu1 }
 0x444   : > { %v1128_v4 = vadd.f32 %v1507_v63, %v1417_v0  ;;  %v1119_v5 = vpop.f32.mrb[5].mxu1 }
 0x445   : > { %v1120_v6 = vadd.f32 %v1417_v0, %v1119_v5  ;;  %v1508_v8 = vpop.f32.mrb[6].mxu1 }
 0x446   : > { %v1140_v9 = vmul.f32 0.70710677, %v1128_v4  ;;  %v1131_v20 = vadd.f32 %v1508_v8, %v1417_v0  ;;  %v1122_v10 = vpop.f32.mrb[7].mxu1  ;;  %v1136_v24 = vmul.f32 0.5, %v1128_v4 }
 0x447   : > { %v1138_v11 = vmul.f32 0.70710677, %v1120_v6  ;;  %v1123_v38 = vadd.f32 %v1417_v0, %v1122_v10  ;;  %v1134_v25 = vmul.f32 0.5, %v1120_v6 }
 0x448   : > { %1640 = verf.f32 %v1140_v9  ;;  %v1141_v35 = vmul.f32 0.70710677, %v1131_v20  ;;  %v1137_v3 = vmul.f32 0.5, %v1131_v20 }
 0x449   : > { %1642 = verf.f32 %v1138_v11  ;;  %v1139_v12 = vmul.f32 0.70710677, %v1123_v38  ;;  %v1135_v16 = vmul.f32 0.5, %v1123_v38 }
 0x44a   : > { %1644 = verf.f32 %v1141_v35 }
 0x44b   : > { %1646 = verf.f32 %v1139_v12 }
 0x452   : > { %v1641_v13 = vpop.eup %1640 }
 0x453   : > { %v1643_v14 = vpop.eup %1642  ;;  %v1148_v22 = vadd.f32 1.0, %v1641_v13 }
 0x454   : > { %v1645_v23 = vpop.eup %1644  ;;  %v1146_v1 = vadd.f32 1.0, %v1643_v14 }
 0x455   : > { %v1647_v2 = vpop.eup %1646  ;;  %v1149_v7 = vadd.f32 1.0, %v1645_v23  ;;  %v1152_v21 = vmul.f32 %v1148_v22, %v1136_v24 }
 0x456   : > { %v1147_v18 = vadd.f32 1.0, %v1647_v2  ;;  %v1150_v27 = vmul.f32 %v1146_v1, %v1134_v25 }
 0x457   : > { %v1153_v26 = vmul.f32 %v1149_v7, %v1137_v3 }
 0x458   : > { %v1151_v28 = vmul.f32 %v1147_v18, %v1135_v16 }
 0x459   : > { %v1155_v29 = vpack.c.bf16 %v1153_v26, %v1152_v21 }
 0x45a   : > { %v1154_v30 = vpack.c.bf16 %v1151_v28, %v1150_v27 }
 0x45c   : > { %1525 = vmatprep.mubr.bf16.mxu1 %v1154_v30 }
 0x45d   : > { %1526 = vmatmul.mubr.bf16.vlgmr.msra.gmra.mrb[8].mxu1 %v1155_v29 }
 0x530   : > { %v1527_v31 = vpop.f32.mrb[8].mxu1 }
 0x531   : > { %v1271_v36 = vadd.f32 %v1527_v31, %v2007_v59  ;;  %v1254_v37 = vpop.f32.mrb[9].mxu1 }
 0x532   : > { %v1269_v40 = vadd.f32 %v1254_v37, %v2010_v62  ;;  %v1528_v41 = vpop.f32.mrb[10].mxu1 }
 0x533   : > { %v1282_v42 = vadd.f32 %v1430_v32, %v1271_v36  ;;  %v1272_v43 = vadd.f32 %v1528_v41, %v2013_v15  ;;  %v1257_v45 = vpop.f32.mrb[11].mxu1 }
 0x534   : > { %v1280_v46 = vadd.f32 %v1430_v32, %v1269_v40  ;;  %v1270_v44 = vadd.f32 %v1257_v45, %v2016_v17 }
 0x535   : > { %1286 = vst.msk [vmem:[%s1780_s29 + $0x10] sm:$0xff] %vm414_vm0, %v1282_v42  ;;  %v1283_v39 = vadd.f32 %v1430_v32, %v1272_v43 }
 0x536   : > { %1284 = vst.msk [vmem:[%s1780_s29] sm:$0xff] %vm414_vm0, %v1280_v46  ;;  %v1281_v47 = vadd.f32 %v1430_v32, %v1270_v44 }
 0x537   : > { %1287 = vst.msk [vmem:[%s1780_s29 + $0x18] sm:$0xff] %vm414_vm0, %v1283_v39 }
 0x538   : > { %1285 = vst.msk [vmem:[%s1780_s29 + $0x8] sm:$0xff] %vm414_vm0, %v1281_v47 }
 0x539 PF: > { %s20_s17 = sadd.s32 1, %s1686_s17   ;;  %s2113_s13 = smov %s1678_s15 }
 0x53a   : > { %p17_p8 = scmp.ge.s32.totalorder %s20_s17, 6   ;;  %s2114_s14 = smov %s1682_s16 }
 0x53b   : > { %s2115_s15 = smov %s2118_s18  ;;  %s2116_s16 = smov %s2122_s19 }
 0x53c   :  { %19 = sbr.rel (!%p17_p8) target bundleno = 3 (0x3), region = 94 }

// kernel: _lambda_.5
= control target key start
LH: loop header
LB: loop body
LE: loop exit
PB: predicated region body
PF: predicated region fallthrough
CT: control target
= control target key end

     0   :  { %vm53_vm0 = vcmask 261120   ;;  %s711_s0 = inlined_call_operand.vmem [shape: f32[128,32], index: 0, kind: input, shape index: {}]   ;;  %s712_s1 = inlined_call_operand.vmem [shape: f32[1,32], index: 1, kind: input, shape index: {}]   ;;  %s713_s2 = inlined_call_operand.vmem [shape: bf16[32,128], index: 2, kind: input, shape index: {}]   ;;  %s714_s3 = inlined_call_operand.hbm [shape: f32[128,128], index: 3, kind: output, shape index: {}]  }
   0x1   :  { %v515_v0 = vld [vmem:[%s711_s0 + $0x40] sm:$0xff]  ;;  %v525_v2 = vld [vmem:[%s711_s0 + $0x48] sm:$0xff]  ;;  %v543_v8 = vld [vmem:[%s711_s0 + $0x18] sm:$0xff] }
   0x2   :  { %v520_v1 = vld [vmem:[%s711_s0] sm:$0xff]  ;;  %v45_v3 = vmul.f32 %v515_v0, %v515_v0  ;;  %v46_v5 = vmul.f32 %v525_v2, %v525_v2  ;;  %v536_v6 = vld [vmem:[%s711_s0 + $0x8] sm:$0xff]  ;;  %v548_v9 = vld [vmem:[%s711_s0 + $0x10] sm:$0xff]  ;;  %v40_v14 = vmul.f32 %v543_v8, %v543_v8 }
   0x3   :  { %v37_v4 = vmul.f32 %v520_v1, %v520_v1  ;;  %v38_v7 = vmul.f32 %v536_v6, %v536_v6  ;;  %v39_v15 = vmul.f32 %v548_v9, %v548_v9  ;;  %v561_v16 = vld [vmem:[%s711_s0 + $0x58] sm:$0xff]  ;;  %v566_v17 = vld [vmem:[%s711_s0 + $0x50] sm:$0xff] }
   0x4   :  { %v78_v10 = vsel %vm53_vm0, %v45_v3, 0.0  ;;  %v81_v12 = vsel %vm53_vm0, %v46_v5, 0.0 }
   0x5   :  { %v54_v11 = vsel %vm53_vm0, %v37_v4, 0.0  ;;  %79 = vadd.xlane.f32.xlu1 %v78_v10  ;;  %v57_v13 = vsel %vm53_vm0, %v38_v7, 0.0 }
   0x6   :  { %55 = vadd.xlane.f32.xlu0 %v54_v11 }
   0x9   :  { %82 = vadd.xlane.f32.xlu1 %v81_v12 }
   0xa   :  { %58 = vadd.xlane.f32.xlu0 %v57_v13 }
   0xb   :  { %8 = vsyncpa [#allocation4], 0  ;;  %v63_v18 = vsel %vm53_vm0, %v40_v14, 0.0  ;;  %v60_v19 = vsel %vm53_vm0, %v39_v15, 0.0  ;;  %v48_v20 = vmul.f32 %v561_v16, %v561_v16  ;;  %v47_v21 = vmul.f32 %v566_v17, %v566_v17  ;;  %v577_v22 = vld [vmem:[%s711_s0 + $0x28] sm:$0xff]  ;;  %v582_v23 = vld [vmem:[%s711_s0 + $0x20] sm:$0xff] }
   0xc   :  { %v42_v26 = vmul.f32 %v577_v22, %v577_v22  ;;  %v41_v27 = vmul.f32 %v582_v23, %v582_v23  ;;  %v593_v28 = vld [vmem:[%s711_s0 + $0x68] sm:$0xff]  ;;  %v598_v29 = vld [vmem:[%s711_s0 + $0x60] sm:$0xff]  ;;  %v609_v34 = vld [vmem:[%s711_s0 + $0x38] sm:$0xff] }
   0xd   :  { %64 = vadd.xlane.f32.xlu1 %v63_v18  ;;  %v87_v24 = vsel %vm53_vm0, %v48_v20, 0.0  ;;  %v84_v25 = vsel %vm53_vm0, %v47_v21, 0.0  ;;  %v50_v32 = vmul.f32 %v593_v28, %v593_v28  ;;  %v49_v33 = vmul.f32 %v598_v29, %v598_v29  ;;  %v614_v35 = vld [vmem:[%s711_s0 + $0x30] sm:$0xff]  ;;  %v625_v40 = vld [vmem:[%s711_s0 + $0x78] sm:$0xff]  ;;  %v431_v48 = vld [vmem:[%s713_s2] sm:$0xff]  }
   0xe   :  { %61 = vadd.xlane.f32.xlu0 %v60_v19  ;;  %v69_v30 = vsel %vm53_vm0, %v42_v26, 0.0  ;;  %v66_v31 = vsel %vm53_vm0, %v41_v27, 0.0  ;;  %v44_v38 = vmul.f32 %v609_v34, %v609_v34  ;;  %v43_v39 = vmul.f32 %v614_v35, %v614_v35  ;;  %v630_v41 = vld [vmem:[%s711_s0 + $0x70] sm:$0xff]  ;;  %404 = vmatprep.subr.bf16.mxu0 %v431_v48  ;;  %v432_v49 = vld [vmem:[%s713_s2 + $0x8] sm:$0xff]  }
   0xf   :  { %v93_v36 = vsel %vm53_vm0, %v50_v32, 0.0  ;;  %v90_v37 = vsel %vm53_vm0, %v49_v33, 0.0  ;;  %v52_v44 = vmul.f32 %v625_v40, %v625_v40  ;;  %v51_v45 = vmul.f32 %v630_v41, %v630_v41  ;;  %424 = vmatprep.subr.bf16.mxu1 %v431_v48  ;;  %405 = vmatpush3.bf16.msra.mxu0 %v431_v48 }
  0x10   :  { %v75_v42 = vsel %vm53_vm0, %v44_v38, 0.0  ;;  %v72_v43 = vsel %vm53_vm0, %v43_v39, 0.0  ;;  %426 = vmatpush3.bf16.msra.mxu1 %v431_v48  ;;  %406 = vmatprep.subr.bf16.mxu0 %v432_v49 }
  0x11   :  { %88 = vadd.xlane.f32.xlu1 %v87_v24  ;;  %v99_v46 = vsel %vm53_vm0, %v52_v44, 0.0  ;;  %v96_v47 = vsel %vm53_vm0, %v51_v45, 0.0  ;;  %425 = vmatprep.subr.bf16.mxu1 %v432_v49 }
  0x12   :  { %85 = vadd.xlane.f32.xlu0 %v84_v25 }
  0x13   :  { %407 = vmatpush3.bf16.msra.mxu0 %v432_v49 }
  0x14   :  { %427 = vmatpush3.bf16.msra.mxu1 %v432_v49 }
  0x15   :  { %70 = vadd.xlane.f32.xlu1 %v69_v30  ;;  %v650_v30 = vld [vmem:[%s712_s1] ss:$0 sm:$0xff]  ;;  %s489_s1 = smov [#allocation3]  }
  0x16   :  { %67 = vadd.xlane.f32.xlu0 %v66_v31  ;;  %s372_s21 = sshll.u32 %s489_s1, 4  ;;  %s373_s21 = int_to_ptr.vmem [resolvable:$true] %s372_s21 }
  0x17   :  { %s465_s22 = scalar_lea.vmem %s373_s21, 2048  ;;  %p470_p1 = scmp.lt.s32.totalorder %s373_s21, %s373_s21 }
  0x18   :  { %p466_p0 = scmp.ne.s32.totalorder %s373_s21, %s465_s22  ;;  %p471_p2 = scmp.lt.s32.totalorder %s465_s22, %s465_s22 }
  0x19   :  { %94 = vadd.xlane.f32.xlu1 %v93_v36 }
  0x1a   :  { %91 = vadd.xlane.f32.xlu0 %v90_v37  ;;  %p472_p3 = por %p471_p2, %p470_p1 }
  0x1c   :  { %p473_p4 = pnand %p472_p3, %p466_p0 }
  0x1d   :  { %76 = vadd.xlane.f32.xlu1 %v75_v42 }
  0x1e   :  { %73 = vadd.xlane.f32.xlu0 %v72_v43 }
  0x21   :  { %100 = vadd.xlane.f32.xlu1 %v99_v46 }
  0x22   :  { %97 = vadd.xlane.f32.xlu0 %v96_v47 }
  0x92   :  { %v80_v50 = vpop.xlane.xlu1 %79 }
  0x93   :  { %v56_v51 = vpop.xlane.xlu0 %55  ;;  %v111_v52 = vmul.f32 0.03125, %v80_v50 }
  0x94   :  { %v103_v53 = vmul.f32 0.03125, %v56_v51 }
  0x95   :  { %v127_v54 = vadd.f32 1.1920929e-07, %v111_v52 }
  0x96   :  { %v119_v55 = vadd.f32 1.1920929e-07, %v103_v53  ;;  %v83_v56 = vpop.xlane.xlu1 %82 }
  0x97   :  { %v59_v57 = vpop.xlane.xlu0 %58  ;;  %433 = vrsqrt.f32 %v127_v54  ;;  %v112_v58 = vmul.f32 0.03125, %v83_v56 }
  0x98   :  { %v104_v59 = vmul.f32 0.03125, %v59_v57  ;;  %435 = vrsqrt.f32 %v119_v55 }
  0x99   :  { %v128_v60 = vadd.f32 1.1920929e-07, %v112_v58 }
  0x9a   :  { %v120_v61 = vadd.f32 1.1920929e-07, %v104_v59  ;;  %v65_v62 = vpop.xlane.xlu1 %64 }
  0x9b   :  { %v62_v63 = vpop.xlane.xlu0 %61  ;;  %437 = vrsqrt.f32 %v128_v60  ;;  %v106_v3 = vmul.f32 0.03125, %v65_v62 }
  0x9c   :  { %v105_v4 = vmul.f32 0.03125, %v62_v63  ;;  %439 = vrsqrt.f32 %v120_v61 }
  0x9d   :  { %v122_v5 = vadd.f32 1.1920929e-07, %v106_v3 }
  0x9e   :  { %v121_v7 = vadd.f32 1.1920929e-07, %v105_v4  ;;  %v89_v10 = vpop.xlane.xlu1 %88 }
  0x9f   :  { %v86_v11 = vpop.xlane.xlu0 %85  ;;  %441 = vrsqrt.f32 %v122_v5  ;;  %v114_v12 = vmul.f32 0.03125, %v89_v10 }
  0xa0   :  { %v113_v13 = vmul.f32 0.03125, %v86_v11  ;;  %443 = vrsqrt.f32 %v121_v7 }
  0xa1   :  { %v434_v14 = vpop.eup %433  ;;  %v130_v15 = vadd.f32 1.1920929e-07, %v114_v12 }
  0xa2   :  { %v129_v18 = vadd.f32 1.1920929e-07, %v113_v13  ;;  %v436_v19 = vpop.eup %435  ;;  %v71_v20 = vpop.xlane.xlu1 %70  ;;  %v159_v26 = vmul.f32 %v434_v14, %v515_v0 }
  0xa3   :  { %v68_v21 = vpop.xlane.xlu0 %67  ;;  %445 = vrsqrt.f32 %v130_v15  ;;  %v108_v24 = vmul.f32 0.03125, %v71_v20  ;;  %v151_v31 = vmul.f32 %v436_v19, %v520_v1 }
  0xa4   :  { %v107_v25 = vmul.f32 0.03125, %v68_v21  ;;  %447 = vrsqrt.f32 %v129_v18  ;;  %v181_v44 = vmul.f32 %v650_v30, %v159_v26 }
  0xa5   :  { %v438_v27 = vpop.eup %437  ;;  %v124_v32 = vadd.f32 1.1920929e-07, %v108_v24  ;;  %v173_v1 = vmul.f32 %v650_v30, %v151_v31 }
  0xa6   :  { %v123_v33 = vadd.f32 1.1920929e-07, %v107_v25  ;;  %v440_v36 = vpop.eup %439  ;;  %v160_v37 = vmul.f32 %v438_v27, %v525_v2  ;;  %v95_v38 = vpop.xlane.xlu1 %94 }
  0xa7   :  { %v92_v39 = vpop.xlane.xlu0 %91  ;;  %v152_v42 = vmul.f32 %v440_v36, %v536_v6  ;;  %449 = vrsqrt.f32 %v124_v32  ;;  %v116_v0 = vmul.f32 0.03125, %v95_v38 }
  0xa8   :  { %v115_v43 = vmul.f32 0.03125, %v92_v39  ;;  %v182_v45 = vmul.f32 %v650_v30, %v160_v37  ;;  %451 = vrsqrt.f32 %v123_v33 }
  0xa9   :  { %v442_v46 = vpop.eup %441  ;;  %v174_v47 = vmul.f32 %v650_v30, %v152_v42  ;;  %v132_v48 = vadd.f32 1.1920929e-07, %v116_v0 }
  0xaa   :  { %v131_v49 = vadd.f32 1.1920929e-07, %v115_v43  ;;  %v444_v2 = vpop.eup %443  ;;  %v193_v50 = vpack.c.bf16 %v182_v45, %v181_v44  ;;  %v154_v51 = vmul.f32 %v442_v46, %v543_v8  ;;  %v77_v6 = vpop.xlane.xlu1 %76 }
  0xab   :  { %v74_v52 = vpop.xlane.xlu0 %73  ;;  %v189_v53 = vpack.c.bf16 %v174_v47, %v173_v1  ;;  %v153_v54 = vmul.f32 %v444_v2, %v548_v9  ;;  %453 = vrsqrt.f32 %v132_v48  ;;  %v110_v55 = vmul.f32 0.03125, %v77_v6 }
  0xac   :  { %201 = vst.msk [vmem:[#allocation2 + $0x20] sm:$0xff] %vm53_vm0, %v193_v50  ;;  %v176_v56 = vmul.f32 %v650_v30, %v154_v51  ;;  %455 = vrsqrt.f32 %v131_v49  ;;  %v109_v57 = vmul.f32 0.03125, %v74_v52 }
  0xad   :  { %v446_v58 = vpop.eup %445  ;;  %197 = vst.msk [vmem:[#allocation2] sm:$0xff] %vm53_vm0, %v189_v53  ;;  %v175_v59 = vmul.f32 %v650_v30, %v153_v54  ;;  %v126_v60 = vadd.f32 1.1920929e-07, %v110_v55 }
  0xae   :  { %v448_v8 = vpop.eup %447  ;;  %v162_v61 = vmul.f32 %v446_v58, %v561_v16  ;;  %v125_v62 = vadd.f32 1.1920929e-07, %v109_v57  ;;  %v101_v63 = vpop.xlane.xlu1 %100 }
  0xaf   :  { %v98_v9 = vpop.xlane.xlu0 %97  ;;  %v190_v3 = vpack.c.bf16 %v176_v56, %v175_v59  ;;  %v161_v4 = vmul.f32 %v448_v8, %v566_v17  ;;  %457 = vrsqrt.f32 %v126_v60  ;;  %v118_v5 = vmul.f32 0.03125, %v101_v63 }
  0xb0   :  { %v184_v7 = vmul.f32 %v650_v30, %v162_v61  ;;  %459 = vrsqrt.f32 %v125_v62  ;;  %v117_v10 = vmul.f32 0.03125, %v98_v9 }
  0xb1   :  { %v450_v11 = vpop.eup %449  ;;  %198 = vst.msk [vmem:[#allocation2 + $0x8] sm:$0xff] %vm53_vm0, %v190_v3  ;;  %v183_v12 = vmul.f32 %v650_v30, %v161_v4  ;;  %v134_v13 = vadd.f32 1.1920929e-07, %v118_v5 }
  0xb2   :  { %v452_v14 = vpop.eup %451  ;;  %v156_v16 = vmul.f32 %v450_v11, %v577_v22  ;;  %v133_v15 = vadd.f32 1.1920929e-07, %v117_v10 }
  0xb3   :  { %v194_v18 = vpack.c.bf16 %v184_v7, %v183_v12  ;;  %v155_v19 = vmul.f32 %v452_v14, %v582_v23  ;;  %461 = vrsqrt.f32 %v134_v13  ;;  %v209_v17 = vld [vmem:[#allocation2 + $0x20] sm:$0xff] }
  0xb4   :  { %v178_v20 = vmul.f32 %v650_v30, %v156_v16  ;;  %463 = vrsqrt.f32 %v133_v15  ;;  %v205_v21 = vld [vmem:[#allocation2] sm:$0xff]  ;;  %416 = vmatprep.mubr.msk.bf16.mxu1 %vm53_vm0, %v209_v17 }
  0xb5   :  { %v454_v24 = vpop.eup %453  ;;  %202 = vst.msk [vmem:[#allocation2 + $0x28] sm:$0xff] %vm53_vm0, %v194_v18  ;;  %v177_v25 = vmul.f32 %v650_v30, %v155_v19  ;;  %408 = vmatprep.mubr.msk.bf16.mxu0 %vm53_vm0, %v205_v21 }
  0xb6   :  { %v456_v22 = vpop.eup %455  ;;  %v164_v26 = vmul.f32 %v454_v24, %v593_v28 }
  0xb7   :  { %v191_v27 = vpack.c.bf16 %v178_v20, %v177_v25  ;;  %v163_v23 = vmul.f32 %v456_v22, %v598_v29 }
  0xb8   :  { %v186_v31 = vmul.f32 %v650_v30, %v164_v26  ;;  %v206_v32 = vld [vmem:[#allocation2 + $0x8] sm:$0xff] }
  0xb9   :  { %v458_v33 = vpop.eup %457  ;;  %199 = vst.msk [vmem:[#allocation2 + $0x10] sm:$0xff] %vm53_vm0, %v191_v27  ;;  %v185_v36 = vmul.f32 %v650_v30, %v163_v23  ;;  %409 = vmatmul.mubr.msk.bf16.vlgmr.msra.gmra.mrb[0].mxu0 %vm53_vm0, %v206_v32 }
  0xba   :  { %v460_v37 = vpop.eup %459  ;;  %v158_v38 = vmul.f32 %v458_v33, %v609_v34 }
  0xbb   :  { %v195_v39 = vpack.c.bf16 %v186_v31, %v185_v36  ;;  %v157_v42 = vmul.f32 %v460_v37, %v614_v35 }
  0xbc   :  { %v180_v28 = vmul.f32 %v650_v30, %v158_v38  ;;  %v210_v0 = vld [vmem:[#allocation2 + $0x28] sm:$0xff] }
  0xbd   :  { %v462_v29 = vpop.eup %461  ;;  %203 = vst.msk [vmem:[#allocation2 + $0x30] sm:$0xff] %vm53_vm0, %v195_v39  ;;  %v179_v43 = vmul.f32 %v650_v30, %v157_v42  ;;  %417 = vmatmul.mubr.msk.bf16.vlgmr.msra.gmra.mrb[0].mxu1 %vm53_vm0, %v210_v0 }
  0xbe   :  { %v464_v44 = vpop.eup %463  ;;  %v166_v45 = vmul.f32 %v462_v29, %v625_v40 }
  0xbf   :  { %v192_v46 = vpack.c.bf16 %v180_v28, %v179_v43  ;;  %v165_v1 = vmul.f32 %v464_v44, %v630_v41 }
  0xc0   :  { %v188_v34 = vmul.f32 %v650_v30, %v166_v45  ;;  %v207_v47 = vld [vmem:[#allocation2 + $0x10] sm:$0xff] }
  0xc1   :  { %200 = vst.msk [vmem:[#allocation2 + $0x18] sm:$0xff] %vm53_vm0, %v192_v46  ;;  %v187_v35 = vmul.f32 %v650_v30, %v165_v1  ;;  %412 = vmatprep.mubr.msk.bf16.mxu0 %vm53_vm0, %v207_v47 }
  0xc3   :  { %v196_v48 = vpack.c.bf16 %v188_v34, %v187_v35 }
  0xc4   :  { %v211_v49 = vld [vmem:[#allocation2 + $0x30] sm:$0xff] }
  0xc5   :  { %204 = vst.msk [vmem:[#allocation2 + $0x38] sm:$0xff] %vm53_vm0, %v196_v48  ;;  %420 = vmatprep.mubr.msk.bf16.mxu1 %vm53_vm0, %v211_v49 }
  0xc8   :  { %v208_v2 = vld [vmem:[#allocation2 + $0x18] sm:$0xff] }
  0xc9   :  { %413 = vmatmul.mubr.msk.bf16.gmra.mrb[4].mxu0 %vm53_vm0, %v208_v2 }
  0xcc   :  { %v212_v40 = vld [vmem:[#allocation2 + $0x38] sm:$0xff] }
  0xcd   :  { %421 = vmatmul.mubr.msk.bf16.gmra.mrb[4].mxu1 %vm53_vm0, %v212_v40 }
 0x18c   :  { %v410_v41 = vpop.f32.mrb[0].mxu0 }
 0x18d   :  { %353 = vst [vmem:[#allocation3 + $0x10] sm:$0xff] %v410_v41  ;;  %v288_v50 = vpop.f32.mrb[1].mxu0 }
 0x18e   :  { %351 = vst [vmem:[#allocation3] sm:$0xff] %v288_v50  ;;  %v411_v51 = vpop.f32.mrb[2].mxu0 }
 0x18f   :  { %354 = vst [vmem:[#allocation3 + $0x18] sm:$0xff] %v411_v51  ;;  %v291_v30 = vpop.f32.mrb[3].mxu0 }
 0x190   :  { %352 = vst [vmem:[#allocation3 + $0x8] sm:$0xff] %v291_v30  ;;  %v418_v6 = vpop.f32.mrb[0].mxu1 }
 0x191   :  { %361 = vst [vmem:[#allocation3 + $0x50] sm:$0xff] %v418_v6  ;;  %v320_v52 = vpop.f32.mrb[1].mxu1 }
 0x192   :  { %359 = vst [vmem:[#allocation3 + $0x40] sm:$0xff] %v320_v52  ;;  %v419_v53 = vpop.f32.mrb[2].mxu1 }
 0x193   :  { %362 = vst [vmem:[#allocation3 + $0x58] sm:$0xff] %v419_v53  ;;  %v323_v54 = vpop.f32.mrb[3].mxu1 }
 0x194   :  { %360 = vst [vmem:[#allocation3 + $0x48] sm:$0xff] %v323_v54 }
 0x19c   :  { %v414_v55 = vpop.f32.mrb[4].mxu0 }
 0x19d   :  { %357 = vst [vmem:[#allocation3 + $0x30] sm:$0xff] %v414_v55  ;;  %v304_v56 = vpop.f32.mrb[5].mxu0 }
 0x19e   :  { %355 = vst [vmem:[#allocation3 + $0x20] sm:$0xff] %v304_v56  ;;  %v415_v57 = vpop.f32.mrb[6].mxu0 }
 0x19f   :  { %358 = vst [vmem:[#allocation3 + $0x38] sm:$0xff] %v415_v57  ;;  %v307_v58 = vpop.f32.mrb[7].mxu0 }
 0x1a0   :  { %356 = vst [vmem:[#allocation3 + $0x28] sm:$0xff] %v307_v58  ;;  %v422_v59 = vpop.f32.mrb[4].mxu1 }
 0x1a1   :  { %365 = vst [vmem:[#allocation3 + $0x70] sm:$0xff] %v422_v59  ;;  %v336_v60 = vpop.f32.mrb[5].mxu1 }
 0x1a2   :  { %363 = vst [vmem:[#allocation3 + $0x60] sm:$0xff] %v336_v60  ;;  %v423_v8 = vpop.f32.mrb[6].mxu1 }
 0x1a3   :  { %366 = vst [vmem:[#allocation3 + $0x78] sm:$0xff] %v423_v8  ;;  %v339_v61 = vpop.f32.mrb[7].mxu1 }
 0x1a4   :  { %364 = vst [vmem:[#allocation3 + $0x68] sm:$0xff] %v339_v61 }
 0x1a5   :  { %476 = shalt.err (!%p473_p4)
}
 0x1a6   :  { %s477_s25 = scalar_lea.hbm %s714_s3, 2048 }
 0x1a7   :  { %p478_p5 = scmp.ne.s32.totalorder %s714_s3, %s477_s25  ;;  %p481_p6 = scmp.lt.u32.totalorder %s477_s25, %s714_s3 }
 0x1a9   :  { %p483_p7 = pnand %p481_p6, %p478_p5 }
 0x1ab   :  { %486 = shalt.err (!%p483_p7)
}
 0x1ac   :  { %s490_s30 = smov 128   ;;  %s491_s4 = smov 8  }
 0x1ad   :  { %378 = dma.vmem_to_hbm [thread:$0]  %s373_s21, 2048, %s714_s3, [#allocation4], %s490_s30, %s490_s30, %s491_s4  }
 0x1ae   :  { %487 = dma.done.wait [#allocation4], 2048  }
 0x1af   :  { %488 = vsyncadd [#allocation4], 4294965248 }
 0x1b0   :  { %382 = vsyncpa [#allocation4], 1 }

</bundles_post_ra>
